<compile_context>
chip_gen: v5e
topology: v5e:2x2
jax: 0.10.0
libtpu: 0.0.40
codegen_flags: <defaults>
</compile_context>

<pallas_src>
import functools

import jax
import jax.numpy as jnp
import numpy as np
from jax.experimental import pallas as pl
from jax.experimental.pallas import tpu as pltpu


# ----------------------------------------------------------------------------
# In-kernel helpers (operate on loaded jnp values, not refs).
# ----------------------------------------------------------------------------
def _iota_parity(tile_h, wk):
    """Row/col parity for the un-folded layout.  Valid because the wrapper only
    uses this path with a single tile along H (row offset 0)."""
    row = jax.lax.broadcasted_iota(jnp.int32, (tile_h, wk), 0)
    col = jax.lax.broadcasted_iota(jnp.int32, (tile_h, wk), 1)
    return row & 1, col & 1


def _group_sums(x, gm, use_row_iota, tile_h, wk):
    """Per parity-group per-channel sums of a (B, C, TH, Wk) tile -> 4x (B, C) f32."""
    if use_row_iota:
        hp, wp = _iota_parity(tile_h, wk)
        xf = x.astype(jnp.float32)
        out = []
        for g in range(4):
            m = (hp == g // 2) & (wp == g % 2)
            masked = jnp.where(m, xf, 0.0)
            out.append(jnp.sum(jnp.sum(masked, axis=-1), axis=-1))
        return out
    # Folded layout: parity is a pure lane function -> one sublane reduce then
    # 4 small lane-masked reduces (gm is the static (4, Wk) 0/1 group mask).
    xs = jnp.sum(x.astype(jnp.float32), axis=2)                     # (B, C, Wk)
    return [jnp.sum(xs * gm[g:g + 1][None], axis=-1) for g in range(4)]


def _lane_scale_slab(wts4, gm):
    """(B, C, Wk) scale slab: slab[b, c, l] = wts[group(l)][b, c]."""
    slab = wts4[0][:, :, None] * gm[0:1][None]
    for g in range(1, 4):
        slab = slab + wts4[g][:, :, None] * gm[g:g + 1][None]
    return slab


def _iota_scale(wts4, out_dtype, tile_h, wk):
    """(B, C, TH, Wk) scale for the un-folded layout (weights cast before the
    selects so bf16 inputs are not widened)."""
    hp, wp = _iota_parity(tile_h, wk)
    w = [wts4[g].astype(out_dtype)[:, :, None, None] for g in range(4)]
    return jnp.where(hp == 0,
                     jnp.where(wp == 0, w[0], w[1]),
                     jnp.where(wp == 0, w[2], w[3]))


def _se_weights(gap, w1g, b1g, w2g, b2g):
    """sigmoid(relu(gap @ w1g.T + b1g) @ w2g.T + b2g), all f32.
    gap (B, C); w1g (CMID, C); b1g (1, CMID); w2g (C, CMID); b2g (1, C)."""
    cmid, c = w1g.shape
    if c >= 128 and cmid >= 8:          # realistic SE sizes -> MXU
        h = jax.lax.dot_general(gap, w1g, (((1,), (1,)), ((), ())),
                                preferred_element_type=jnp.float32) + b1g
        h = jnp.maximum(h, 0.0)
        z = jax.lax.dot_general(h, w2g, (((1,), (1,)), ((), ())),
                                preferred_element_type=jnp.float32) + b2g
    else:                               # tiny C: broadcast-and-sum fallback
        h = jnp.sum(gap[:, None, :] * w1g[None, :, :], axis=-1) + b1g
        h = jnp.maximum(h, 0.0)
        z = jnp.sum(h[:, None, :] * w2g[None, :, :], axis=-1) + b2g
    return jax.nn.sigmoid(z)


# ----------------------------------------------------------------------------
# Kernels.
# ----------------------------------------------------------------------------
def _fused_kernel(gmask_ref, w1_ref, b1_ref, w2_ref, b2_ref, x_ref, y_ref, *,
                  counts, use_row_iota, hk, wk):
    """Whole (folded) feature map resident in VMEM: GAP + MLPs + rescale."""
    x = x_ref[...]
    gm = gmask_ref[...]
    w1 = w1_ref[...]
    b1 = b1_ref[...]
    w2 = w2_ref[...]
    b2 = b2_ref[...]

    sums = _group_sums(x, gm, use_row_iota, hk, wk)
    wts = [_se_weights(sums[g] * (1.0 / counts[g]),
                       w1[g], b1[g:g + 1, :], w2[g], b2[g:g + 1, :])
           for g in range(4)]

    if use_row_iota:
        y_ref[...] = (x * _iota_scale(wts, x.dtype, hk, wk)).astype(y_ref.dtype)
    else:
        slab = _lane_scale_slab(wts, gm).astype(x.dtype)        # (B, C, Wk)
        y_ref[...] = (x * slab[:, :, None, :]).astype(y_ref.dtype)


def _gap_partial_kernel(gmask_ref, x_ref, part_ref, acc_ref, *,
                        use_row_iota, tile_h, wk):
    """Streaming phase 1: per-slab per-group f32 channel sums."""
    j = pl.program_id(1)                 # tile within slab ("arbitrary" axis)

    @pl.when(j == 0)
    def _init():
        acc_ref[...] = jnp.zeros_like(acc_ref)

    sums = _group_sums(x_ref[...], gmask_ref[...], use_row_iota, tile_h, wk)
    for g in range(4):
        acc_ref[g] += sums[g]

    @pl.when(j == pl.num_programs(1) - 1)
    def _flush():
        part_ref[...] = acc_ref[...]


def _rescale_kernel(gmask_ref, wts_ref, x_ref, y_ref, *, use_row_iota, tile_h, wk):
    """Streaming phase 2: multiply each pixel by its parity-group channel weight."""
    x = x_ref[...]
    wts = wts_ref[...]                   # (4, B, C) f32
    if use_row_iota:
        y_ref[...] = (x * _iota_scale(wts, x.dtype, tile_h, wk)).astype(y_ref.dtype)
    else:
        slab = _lane_scale_slab(wts, gmask_ref[...]).astype(x.dtype)
        y_ref[...] = (x * slab[:, :, None, :]).astype(y_ref.dtype)


# ----------------------------------------------------------------------------
# Wrapper-side sizing helpers.
# ----------------------------------------------------------------------------
def _vmem_limit_bytes():
    try:
        cap = int(pltpu.get_tpu_info().vmem_capacity_bytes)
    except Exception:                    # conservative (v7x-sized) fallback
        cap = 64 * 1024 * 1024
    # v5e/v6e (128 MiB) -> 96 MiB limit; v7x (64 MiB) -> 48 MiB limit.
    return min(cap * 3 // 4, 96 * 1024 * 1024)


def _sublane(itemsize):
    return {4: 8, 2: 16, 1: 32}.get(itemsize, 8)


def _choose_fold(H, W, row_bytes, budget_bytes, sublane):
    """Even k dividing H such that a (B, C, sublane, k*W) min-tile fits the
    budget, preferring lane-dense (k*W % 128 == 0, else >= 128) last dims."""
    if H % 2 != 0:
        return 1
    divs = [k for k in range(2, H + 1, 2) if H % k == 0]
    ok = [k for k in divs if k * sublane * row_bytes <= budget_bytes]
    if not ok:
        return 2
    for k in ok:
        if (k * W) % 128 == 0:
            return k
    for k in ok:
        if k * W >= 128:
            return k
    return ok[-1]


def _choose_tile_h(B, C, Hk, Wk, itemsize, budget_bytes):
    """Largest sublane-aligned tile height dividing Hk that fits the budget,
    preferring >= 2 grid steps so the DMA pipeline overlaps compute."""
    sub = _sublane(itemsize)
    cands = [t for t in range(sub, Hk + 1, sub) if Hk % t == 0]
    if not cands:
        return Hk
    fits = [t for t in cands if B * C * t * Wk * itemsize <= budget_bytes]
    if not fits:
        return cands[0]
    multi = [t for t in fits if Hk // t >= 2]
    return max(multi) if multi else max(fits)


# ----------------------------------------------------------------------------
# Public wrapper.
# ----------------------------------------------------------------------------
def parallel_se_block(x, w1, b1, w2, b2, *, force_streaming=False):
    """x: (B, C, H, W).  Per-group SE params, group g = 2*(h%2) + (w%2)
    (g0<->se_block1, g1<->se_block3, g2<->se_block2, g3<->se_block4):
      w1: (4, C//r, C)   b1: (4, C//r)   w2: (4, C, C//r)   b2: (4, C)
    """
    B, C, H, W = x.shape
    cmid = w1.shape[1]
    itemsize = jnp.dtype(x.dtype).itemsize
    sub = _sublane(itemsize)

    vmem_limit = _vmem_limit_bytes()
    budget_p1 = vmem_limit // 5          # 2 double-buffered in-tiles + f32 work copy
    budget_p2 = vmem_limit * 3 // 16     # 2 in-buffers + 2 out-buffers

    # Lane-dense fold (free reshape): (B, C, H, W) -> (B, C, H//k, k*W), k even.
    row_bytes = B * C * W * itemsize
    k = _choose_fold(H, W, row_bytes, budget_p2, sub)
    xk = x.reshape(B, C, H // k, k * W) if k > 1 else x
    Hk, Wk = xk.shape[2], xk.shape[3]
    use_row_iota = (k == 1)              # odd H: parity needs the row index

    # Static (4, Wk) 0/1 group masks: with k even, k*(folded row) is even, so
    # parity is a pure lane function of the folded layout.
    lanes = np.arange(Wk)
    grp = 2 * ((lanes // W) % 2) + (lanes % W) % 2
    gmask = jnp.asarray(np.stack([(grp == g) for g in range(4)]).astype(np.float32))

    n_h = ((H + 1) // 2, H // 2)
    n_w = ((W + 1) // 2, W // 2)
    counts = tuple(float(n_h[g // 2] * n_w[g % 2]) for g in range(4))

    x_bytes = B * C * Hk * Wk * itemsize
    fused_footprint = 2 * x_bytes + B * C * Hk * Wk * 4   # x + y + f32 working copy
    use_fused = (not force_streaming) and fused_footprint <= vmem_limit // 2

    if use_fused:
        kern = functools.partial(_fused_kernel, counts=counts,
                                 use_row_iota=use_row_iota, hk=Hk, wk=Wk)
        yk = pl.pallas_call(
            kern,
            out_shape=jax.ShapeDtypeStruct((B, C, Hk, Wk), x.dtype),
            grid=(1,),
            in_specs=[
                pl.BlockSpec((4, Wk), lambda i: (0, 0)),
                pl.BlockSpec((4, cmid, C), lambda i: (0, 0, 0)),
                pl.BlockSpec((4, cmid), lambda i: (0, 0)),
                pl.BlockSpec((4, C, cmid), lambda i: (0, 0, 0)),
                pl.BlockSpec((4, C), lambda i: (0, 0)),
                pl.BlockSpec((B, C, Hk, Wk), lambda i: (0, 0, 0, 0)),
            ],
            out_specs=pl.BlockSpec((B, C, Hk, Wk), lambda i: (0, 0, 0, 0)),
            compiler_params=pltpu.CompilerParams(
                dimension_semantics=("arbitrary",),
                vmem_limit_bytes=vmem_limit),
        )(gmask, w1, b1, w2, b2, xk)
        return yk.reshape(B, C, H, W) if k > 1 else yk

    # ------------------------- streaming path -------------------------------
    # Phase 1: 2-D grid, slabs "parallel" (v7x megacore shards the HBM read
    # stream), tiles within a slab "arbitrary" with a resident f32 accumulator.
    th1 = _choose_tile_h(B, C, Hk, Wk, itemsize, budget_p1)
    n1 = Hk // th1
    n_slabs = 2 if (n1 >= 2 and n1 % 2 == 0) else 1
    tiles_per_slab = n1 // n_slabs
    # TODO(synk): odd H (use_row_iota) streams a single un-tiled block along H;
    # fine for realistic SE feature maps, not for huge odd-H inputs.

    gap_kern = functools.partial(_gap_partial_kernel, use_row_iota=use_row_iota,
                                 tile_h=th1, wk=Wk)

    def _x1_map(s, j):
        return (0, 0, s * tiles_per_slab + j, 0)

    part = pl.pallas_call(
        gap_kern,
        out_shape=jax.ShapeDtypeStruct((n_slabs, 4, B, C), jnp.float32),
        grid=(n_slabs, tiles_per_slab),
        in_specs=[
            pl.BlockSpec((4, Wk), lambda s, j: (0, 0)),
            pl.BlockSpec((B, C, th1, Wk), _x1_map),
        ],
        out_specs=pl.BlockSpec((None, 4, B, C), lambda s, j: (s, 0, 0, 0)),
        scratch_shapes=[pltpu.VMEM((4, B, C), jnp.float32)],
        compiler_params=pltpu.CompilerParams(
            dimension_semantics=("parallel", "arbitrary"),
            vmem_limit_bytes=vmem_limit),
    )(gmask, xk)

    # Tiny per-group SE MLPs on the combined sums (negligible work) in plain
    # JAX so phase 1 stays a pure bandwidth-bound reduction.
    gaps = jnp.sum(part, axis=0) / jnp.asarray(counts, jnp.float32)[:, None, None]
    wts = jnp.stack([_se_weights(gaps[g], w1[g], b1[g:g + 1], w2[g], b2[g:g + 1])
                     for g in range(4)])                         # (4, B, C) f32

    # Phase 2: streaming rescale ("parallel" so both v7x cores get work).
    th2 = _choose_tile_h(B, C, Hk, Wk, itemsize, budget_p2)
    n2 = Hk // th2
    resc_kern = functools.partial(_rescale_kernel, use_row_iota=use_row_iota,
                                  tile_h=th2, wk=Wk)
    yk = pl.pallas_call(
        resc_kern,
        out_shape=jax.ShapeDtypeStruct((B, C, Hk, Wk), x.dtype),
        grid=(n2,),
        in_specs=[
            pl.BlockSpec((4, Wk), lambda i: (0, 0)),
            pl.BlockSpec((4, B, C), lambda i: (0, 0, 0)),
            pl.BlockSpec((B, C, th2, Wk), lambda i: (0, 0, i, 0)),
        ],
        out_specs=pl.BlockSpec((B, C, th2, Wk), lambda i: (0, 0, i, 0)),
        compiler_params=pltpu.CompilerParams(
            dimension_semantics=("parallel",),
            vmem_limit_bytes=vmem_limit),
    )(gmask, wts, xk)
    return yk.reshape(B, C, H, W) if k > 1 else yk


# ----------------------------------------------------------------------------
# Pure-JAX reference: literal pool/SE/unpool-scatter semantics.
# ----------------------------------------------------------------------------
def parallel_se_block_ref(x, w1, b1, w2, b2):
    out = jnp.zeros_like(x)
    for g in range(4):
        gh, gw = g // 2, g % 2
        sub = x[:, :, gh::2, gw::2]                  # MaxPool2d(1, stride=2) on shifted view
        gap = jnp.mean(sub.astype(jnp.float32), axis=(2, 3))
        h = jax.nn.relu(gap @ w1[g].T + b1[g])
        wt = jax.nn.sigmoid(h @ w2[g].T + b2[g])     # (B, C)
        se = sub * wt[:, :, None, None].astype(x.dtype)
        out = out.at[:, :, gh::2, gw::2].set(se)     # MaxUnpool2d + pad + sum (disjoint)
    return out


if __name__ == "__main__":
    B, C, H, W = 2, 4, 16, 16
    r = 2
    CMID = C // r

    key = jax.random.PRNGKey(0)
    kx, k1, k2, k3, k4, kx2 = jax.random.split(key, 6)
    x = jax.random.normal(kx, (B, C, H, W), jnp.float32)
    # PyTorch nn.Linear default init: U(-1/sqrt(fan_in), 1/sqrt(fan_in)).
    bnd1 = 1.0 / (C ** 0.5)
    bnd2 = 1.0 / (CMID ** 0.5)
    w1 = jax.random.uniform(k1, (4, CMID, C), jnp.float32, minval=-bnd1, maxval=bnd1)
    b1 = jax.random.uniform(k2, (4, CMID), jnp.float32, minval=-bnd1, maxval=bnd1)
    w2 = jax.random.uniform(k3, (4, C, CMID), jnp.float32, minval=-bnd2, maxval=bnd2)
    b2 = jax.random.uniform(k4, (4, C), jnp.float32, minval=-bnd2, maxval=bnd2)

    # Fused (VMEM-resident) path.
    y = jax.block_until_ready(parallel_se_block(x, w1, b1, w2, b2))
    y_ref = parallel_se_block_ref(x, w1, b1, w2, b2)
    assert y.shape == (B, C, H, W)
    assert jnp.allclose(y, y_ref, atol=1e-4, rtol=1e-4), "fused path mismatch"

    # Streaming (tiled, two-phase) path forced on a taller map for coverage.
    x2 = jax.random.normal(kx2, (B, C, 128, W), jnp.float32)
    y2 = jax.block_until_ready(
        parallel_se_block(x2, w1, b1, w2, b2, force_streaming=True))
    y2_ref = parallel_se_block_ref(x2, w1, b1, w2, b2)
    assert jnp.allclose(y2, y2_ref, atol=1e-4, rtol=1e-4), "streaming path mismatch"

    print("KERNEL_OK")
</pallas_src>

<mosaic_0001>
module attributes {stable_mosaic.version = 11 : i64} {
  func.func @_fused_kernel(%arg0: i32, %arg1: memref<4x128xf32, #tpu.memory_space<vmem>>, %arg2: memref<4x2x4xf32, #tpu.memory_space<vmem>>, %arg3: memref<4x2xf32, #tpu.memory_space<vmem>>, %arg4: memref<4x4x2xf32, #tpu.memory_space<vmem>>, %arg5: memref<4x4xf32, #tpu.memory_space<vmem>>, %arg6: memref<2x4x2x128xf32, #tpu.memory_space<vmem>>, %arg7: memref<2x4x2x128xf32, #tpu.memory_space<vmem>>) attributes {dimension_semantics = [#tpu.dimension_semantics<arbitrary>], iteration_bounds = array<i64: 1>, scalar_prefetch = 0 : i64, scratch_operands = 0 : i64, tpu.core_type = #tpu.core_type<tc>, window_params = [{pipeline_mode = #tpu.pipeline_mode<synchronous>, transform_indices = @transform_0, window_bounds = array<i64: 4, 128>}, {pipeline_mode = #tpu.pipeline_mode<synchronous>, transform_indices = @transform_1, window_bounds = array<i64: 4, 2, 4>}, {pipeline_mode = #tpu.pipeline_mode<synchronous>, transform_indices = @transform_2, window_bounds = array<i64: 4, 2>}, {pipeline_mode = #tpu.pipeline_mode<synchronous>, transform_indices = @transform_3, window_bounds = array<i64: 4, 4, 2>}, {pipeline_mode = #tpu.pipeline_mode<synchronous>, transform_indices = @transform_4, window_bounds = array<i64: 4, 4>}, {pipeline_mode = #tpu.pipeline_mode<synchronous>, transform_indices = @transform_5, window_bounds = array<i64: 2, 4, 2, 128>}, {pipeline_mode = #tpu.pipeline_mode<synchronous>, transform_indices = @transform_6, window_bounds = array<i64: 2, 4, 2, 128>}]} {
    %c0 = arith.constant 0 : index
    %c0_0 = arith.constant 0 : index
    %c0_1 = arith.constant 0 : index
    %c0_2 = arith.constant 0 : index
    %0 = vector.load %arg6[%c0, %c0_0, %c0_1, %c0_2] : memref<2x4x2x128xf32, #tpu.memory_space<vmem>>, vector<2x4x2x128xf32>
    %c0_3 = arith.constant 0 : index
    %c0_4 = arith.constant 0 : index
    %1 = vector.load %arg1[%c0_3, %c0_4] : memref<4x128xf32, #tpu.memory_space<vmem>>, vector<4x128xf32>
    %c0_5 = arith.constant 0 : index
    %c0_6 = arith.constant 0 : index
    %c0_7 = arith.constant 0 : index
    %2 = vector.load %arg2[%c0_5, %c0_6, %c0_7] : memref<4x2x4xf32, #tpu.memory_space<vmem>>, vector<4x2x4xf32>
    %c0_8 = arith.constant 0 : index
    %c0_9 = arith.constant 0 : index
    %3 = vector.load %arg3[%c0_8, %c0_9] : memref<4x2xf32, #tpu.memory_space<vmem>>, vector<4x2xf32>
    %c0_10 = arith.constant 0 : index
    %c0_11 = arith.constant 0 : index
    %c0_12 = arith.constant 0 : index
    %4 = vector.load %arg4[%c0_10, %c0_11, %c0_12] : memref<4x4x2xf32, #tpu.memory_space<vmem>>, vector<4x4x2xf32>
    %c0_13 = arith.constant 0 : index
    %c0_14 = arith.constant 0 : index
    %5 = vector.load %arg5[%c0_13, %c0_14] : memref<4x4xf32, #tpu.memory_space<vmem>>, vector<4x4xf32>
    %cst = arith.constant dense<0.000000e+00> : vector<2x4x128xf32>
    %6 = vector.multi_reduction <add>, %0, %cst [2] : vector<2x4x2x128xf32> to vector<2x4x128xf32>
    %7 = vector.extract_strided_slice %1 {offsets = [0, 0], sizes = [1, 128], strides = [1, 1]} : vector<4x128xf32> to vector<1x128xf32>
    %8 = vector.shape_cast %7 : vector<1x128xf32> to vector<1x1x128xf32>
    %9 = vector.broadcast %8 : vector<1x1x128xf32> to vector<2x4x128xf32>
    %10 = arith.mulf %6, %9 : vector<2x4x128xf32>
    %cst_15 = arith.constant dense<0.000000e+00> : vector<2x4xf32>
    %11 = vector.multi_reduction <add>, %10, %cst_15 [2] : vector<2x4x128xf32> to vector<2x4xf32>
    %12 = vector.extract_strided_slice %1 {offsets = [1, 0], sizes = [1, 128], strides = [1, 1]} : vector<4x128xf32> to vector<1x128xf32>
    %13 = vector.shape_cast %12 : vector<1x128xf32> to vector<1x1x128xf32>
    %14 = vector.broadcast %13 : vector<1x1x128xf32> to vector<2x4x128xf32>
    %15 = arith.mulf %6, %14 : vector<2x4x128xf32>
    %cst_16 = arith.constant dense<0.000000e+00> : vector<2x4xf32>
    %16 = vector.multi_reduction <add>, %15, %cst_16 [2] : vector<2x4x128xf32> to vector<2x4xf32>
    %17 = vector.extract_strided_slice %1 {offsets = [2, 0], sizes = [1, 128], strides = [1, 1]} : vector<4x128xf32> to vector<1x128xf32>
    %18 = vector.shape_cast %17 : vector<1x128xf32> to vector<1x1x128xf32>
    %19 = vector.broadcast %18 : vector<1x1x128xf32> to vector<2x4x128xf32>
    %20 = arith.mulf %6, %19 : vector<2x4x128xf32>
    %cst_17 = arith.constant dense<0.000000e+00> : vector<2x4xf32>
    %21 = vector.multi_reduction <add>, %20, %cst_17 [2] : vector<2x4x128xf32> to vector<2x4xf32>
    %22 = vector.extract_strided_slice %1 {offsets = [3, 0], sizes = [1, 128], strides = [1, 1]} : vector<4x128xf32> to vector<1x128xf32>
    %23 = vector.shape_cast %22 : vector<1x128xf32> to vector<1x1x128xf32>
    %24 = vector.broadcast %23 : vector<1x1x128xf32> to vector<2x4x128xf32>
    %25 = arith.mulf %6, %24 : vector<2x4x128xf32>
    %cst_18 = arith.constant dense<0.000000e+00> : vector<2x4xf32>
    %26 = vector.multi_reduction <add>, %25, %cst_18 [2] : vector<2x4x128xf32> to vector<2x4xf32>
    %cst_19 = arith.constant 1.562500e-02 : f32
    %27 = vector.broadcast %cst_19 : f32 to vector<2x4xf32>
    %28 = arith.mulf %11, %27 : vector<2x4xf32>
    %29 = vector.extract_strided_slice %2 {offsets = [0, 0, 0], sizes = [1, 2, 4], strides = [1, 1, 1]} : vector<4x2x4xf32> to vector<1x2x4xf32>
    %30 = vector.shape_cast %29 : vector<1x2x4xf32> to vector<2x4xf32>
    %31 = vector.extract_strided_slice %3 {offsets = [0, 0], sizes = [1, 2], strides = [1, 1]} : vector<4x2xf32> to vector<1x2xf32>
    %32 = vector.extract_strided_slice %4 {offsets = [0, 0, 0], sizes = [1, 4, 2], strides = [1, 1, 1]} : vector<4x4x2xf32> to vector<1x4x2xf32>
    %33 = vector.shape_cast %32 : vector<1x4x2xf32> to vector<4x2xf32>
    %34 = vector.extract_strided_slice %5 {offsets = [0, 0], sizes = [1, 4], strides = [1, 1]} : vector<4x4xf32> to vector<1x4xf32>
    %35 = vector.shape_cast %28 : vector<2x4xf32> to vector<2x1x4xf32>
    %36 = vector.shape_cast %30 : vector<2x4xf32> to vector<1x2x4xf32>
    %37 = vector.broadcast %35 : vector<2x1x4xf32> to vector<2x2x4xf32>
    %38 = vector.broadcast %36 : vector<1x2x4xf32> to vector<2x2x4xf32>
    %39 = arith.mulf %37, %38 : vector<2x2x4xf32>
    %cst_20 = arith.constant dense<0.000000e+00> : vector<2x2xf32>
    %40 = vector.multi_reduction <add>, %39, %cst_20 [2] : vector<2x2x4xf32> to vector<2x2xf32>
    %41 = vector.broadcast %31 : vector<1x2xf32> to vector<2x2xf32>
    %42 = arith.addf %40, %41 : vector<2x2xf32>
    %cst_21 = arith.constant 0.000000e+00 : f32
    %43 = vector.broadcast %cst_21 : f32 to vector<2x2xf32>
    %44 = arith.maximumf %42, %43 : vector<2x2xf32>
    %45 = vector.shape_cast %44 : vector<2x2xf32> to vector<2x1x2xf32>
    %46 = vector.shape_cast %33 : vector<4x2xf32> to vector<1x4x2xf32>
    %47 = vector.broadcast %45 : vector<2x1x2xf32> to vector<2x4x2xf32>
    %48 = vector.broadcast %46 : vector<1x4x2xf32> to vector<2x4x2xf32>
    %49 = arith.mulf %47, %48 : vector<2x4x2xf32>
    %cst_22 = arith.constant dense<0.000000e+00> : vector<2x4xf32>
    %50 = vector.multi_reduction <add>, %49, %cst_22 [2] : vector<2x4x2xf32> to vector<2x4xf32>
    %51 = vector.broadcast %34 : vector<1x4xf32> to vector<2x4xf32>
    %52 = arith.addf %50, %51 : vector<2x4xf32>
    %53 = arith.negf %52 : vector<2x4xf32>
    %54 = math.exp %53 : vector<2x4xf32>
    %cst_23 = arith.constant 1.000000e+00 : f32
    %55 = vector.broadcast %cst_23 : f32 to vector<2x4xf32>
    %56 = arith.addf %55, %54 : vector<2x4xf32>
    %57 = arith.divf %55, %56 : vector<2x4xf32>
    %cst_24 = arith.constant 1.562500e-02 : f32
    %58 = vector.broadcast %cst_24 : f32 to vector<2x4xf32>
    %59 = arith.mulf %16, %58 : vector<2x4xf32>
    %60 = vector.extract_strided_slice %2 {offsets = [1, 0, 0], sizes = [1, 2, 4], strides = [1, 1, 1]} : vector<4x2x4xf32> to vector<1x2x4xf32>
    %61 = vector.shape_cast %60 : vector<1x2x4xf32> to vector<2x4xf32>
    %62 = vector.extract_strided_slice %3 {offsets = [1, 0], sizes = [1, 2], strides = [1, 1]} : vector<4x2xf32> to vector<1x2xf32>
    %63 = vector.extract_strided_slice %4 {offsets = [1, 0, 0], sizes = [1, 4, 2], strides = [1, 1, 1]} : vector<4x4x2xf32> to vector<1x4x2xf32>
    %64 = vector.shape_cast %63 : vector<1x4x2xf32> to vector<4x2xf32>
    %65 = vector.extract_strided_slice %5 {offsets = [1, 0], sizes = [1, 4], strides = [1, 1]} : vector<4x4xf32> to vector<1x4xf32>
    %66 = vector.shape_cast %59 : vector<2x4xf32> to vector<2x1x4xf32>
    %67 = vector.shape_cast %61 : vector<2x4xf32> to vector<1x2x4xf32>
    %68 = vector.broadcast %66 : vector<2x1x4xf32> to vector<2x2x4xf32>
    %69 = vector.broadcast %67 : vector<1x2x4xf32> to vector<2x2x4xf32>
    %70 = arith.mulf %68, %69 : vector<2x2x4xf32>
    %cst_25 = arith.constant dense<0.000000e+00> : vector<2x2xf32>
    %71 = vector.multi_reduction <add>, %70, %cst_25 [2] : vector<2x2x4xf32> to vector<2x2xf32>
    %72 = vector.broadcast %62 : vector<1x2xf32> to vector<2x2xf32>
    %73 = arith.addf %71, %72 : vector<2x2xf32>
    %cst_26 = arith.constant 0.000000e+00 : f32
    %74 = vector.broadcast %cst_26 : f32 to vector<2x2xf32>
    %75 = arith.maximumf %73, %74 : vector<2x2xf32>
    %76 = vector.shape_cast %75 : vector<2x2xf32> to vector<2x1x2xf32>
    %77 = vector.shape_cast %64 : vector<4x2xf32> to vector<1x4x2xf32>
    %78 = vector.broadcast %76 : vector<2x1x2xf32> to vector<2x4x2xf32>
    %79 = vector.broadcast %77 : vector<1x4x2xf32> to vector<2x4x2xf32>
    %80 = arith.mulf %78, %79 : vector<2x4x2xf32>
    %cst_27 = arith.constant dense<0.000000e+00> : vector<2x4xf32>
    %81 = vector.multi_reduction <add>, %80, %cst_27 [2] : vector<2x4x2xf32> to vector<2x4xf32>
    %82 = vector.broadcast %65 : vector<1x4xf32> to vector<2x4xf32>
    %83 = arith.addf %81, %82 : vector<2x4xf32>
    %84 = arith.negf %83 : vector<2x4xf32>
    %85 = math.exp %84 : vector<2x4xf32>
    %cst_28 = arith.constant 1.000000e+00 : f32
    %86 = vector.broadcast %cst_28 : f32 to vector<2x4xf32>
    %87 = arith.addf %86, %85 : vector<2x4xf32>
    %88 = arith.divf %86, %87 : vector<2x4xf32>
    %cst_29 = arith.constant 1.562500e-02 : f32
    %89 = vector.broadcast %cst_29 : f32 to vector<2x4xf32>
    %90 = arith.mulf %21, %89 : vector<2x4xf32>
    %91 = vector.extract_strided_slice %2 {offsets = [2, 0, 0], sizes = [1, 2, 4], strides = [1, 1, 1]} : vector<4x2x4xf32> to vector<1x2x4xf32>
    %92 = vector.shape_cast %91 : vector<1x2x4xf32> to vector<2x4xf32>
    %93 = vector.extract_strided_slice %3 {offsets = [2, 0], sizes = [1, 2], strides = [1, 1]} : vector<4x2xf32> to vector<1x2xf32>
    %94 = vector.extract_strided_slice %4 {offsets = [2, 0, 0], sizes = [1, 4, 2], strides = [1, 1, 1]} : vector<4x4x2xf32> to vector<1x4x2xf32>
    %95 = vector.shape_cast %94 : vector<1x4x2xf32> to vector<4x2xf32>
    %96 = vector.extract_strided_slice %5 {offsets = [2, 0], sizes = [1, 4], strides = [1, 1]} : vector<4x4xf32> to vector<1x4xf32>
    %97 = vector.shape_cast %90 : vector<2x4xf32> to vector<2x1x4xf32>
    %98 = vector.shape_cast %92 : vector<2x4xf32> to vector<1x2x4xf32>
    %99 = vector.broadcast %97 : vector<2x1x4xf32> to vector<2x2x4xf32>
    %100 = vector.broadcast %98 : vector<1x2x4xf32> to vector<2x2x4xf32>
    %101 = arith.mulf %99, %100 : vector<2x2x4xf32>
    %cst_30 = arith.constant dense<0.000000e+00> : vector<2x2xf32>
    %102 = vector.multi_reduction <add>, %101, %cst_30 [2] : vector<2x2x4xf32> to vector<2x2xf32>
    %103 = vector.broadcast %93 : vector<1x2xf32> to vector<2x2xf32>
    %104 = arith.addf %102, %103 : vector<2x2xf32>
    %cst_31 = arith.constant 0.000000e+00 : f32
    %105 = vector.broadcast %cst_31 : f32 to vector<2x2xf32>
    %106 = arith.maximumf %104, %105 : vector<2x2xf32>
    %107 = vector.shape_cast %106 : vector<2x2xf32> to vector<2x1x2xf32>
    %108 = vector.shape_cast %95 : vector<4x2xf32> to vector<1x4x2xf32>
    %109 = vector.broadcast %107 : vector<2x1x2xf32> to vector<2x4x2xf32>
    %110 = vector.broadcast %108 : vector<1x4x2xf32> to vector<2x4x2xf32>
    %111 = arith.mulf %109, %110 : vector<2x4x2xf32>
    %cst_32 = arith.constant dense<0.000000e+00> : vector<2x4xf32>
    %112 = vector.multi_reduction <add>, %111, %cst_32 [2] : vector<2x4x2xf32> to vector<2x4xf32>
    %113 = vector.broadcast %96 : vector<1x4xf32> to vector<2x4xf32>
    %114 = arith.addf %112, %113 : vector<2x4xf32>
    %115 = arith.negf %114 : vector<2x4xf32>
    %116 = math.exp %115 : vector<2x4xf32>
    %cst_33 = arith.constant 1.000000e+00 : f32
    %117 = vector.broadcast %cst_33 : f32 to vector<2x4xf32>
    %118 = arith.addf %117, %116 : vector<2x4xf32>
    %119 = arith.divf %117, %118 : vector<2x4xf32>
    %cst_34 = arith.constant 1.562500e-02 : f32
    %120 = vector.broadcast %cst_34 : f32 to vector<2x4xf32>
    %121 = arith.mulf %26, %120 : vector<2x4xf32>
    %122 = vector.extract_strided_slice %2 {offsets = [3, 0, 0], sizes = [1, 2, 4], strides = [1, 1, 1]} : vector<4x2x4xf32> to vector<1x2x4xf32>
    %123 = vector.shape_cast %122 : vector<1x2x4xf32> to vector<2x4xf32>
    %124 = vector.extract_strided_slice %3 {offsets = [3, 0], sizes = [1, 2], strides = [1, 1]} : vector<4x2xf32> to vector<1x2xf32>
    %125 = vector.extract_strided_slice %4 {offsets = [3, 0, 0], sizes = [1, 4, 2], strides = [1, 1, 1]} : vector<4x4x2xf32> to vector<1x4x2xf32>
    %126 = vector.shape_cast %125 : vector<1x4x2xf32> to vector<4x2xf32>
    %127 = vector.extract_strided_slice %5 {offsets = [3, 0], sizes = [1, 4], strides = [1, 1]} : vector<4x4xf32> to vector<1x4xf32>
    %128 = vector.shape_cast %121 : vector<2x4xf32> to vector<2x1x4xf32>
    %129 = vector.shape_cast %123 : vector<2x4xf32> to vector<1x2x4xf32>
    %130 = vector.broadcast %128 : vector<2x1x4xf32> to vector<2x2x4xf32>
    %131 = vector.broadcast %129 : vector<1x2x4xf32> to vector<2x2x4xf32>
    %132 = arith.mulf %130, %131 : vector<2x2x4xf32>
    %cst_35 = arith.constant dense<0.000000e+00> : vector<2x2xf32>
    %133 = vector.multi_reduction <add>, %132, %cst_35 [2] : vector<2x2x4xf32> to vector<2x2xf32>
    %134 = vector.broadcast %124 : vector<1x2xf32> to vector<2x2xf32>
    %135 = arith.addf %133, %134 : vector<2x2xf32>
    %cst_36 = arith.constant 0.000000e+00 : f32
    %136 = vector.broadcast %cst_36 : f32 to vector<2x2xf32>
    %137 = arith.maximumf %135, %136 : vector<2x2xf32>
    %138 = vector.shape_cast %137 : vector<2x2xf32> to vector<2x1x2xf32>
    %139 = vector.shape_cast %126 : vector<4x2xf32> to vector<1x4x2xf32>
    %140 = vector.broadcast %138 : vector<2x1x2xf32> to vector<2x4x2xf32>
    %141 = vector.broadcast %139 : vector<1x4x2xf32> to vector<2x4x2xf32>
    %142 = arith.mulf %140, %141 : vector<2x4x2xf32>
    %cst_37 = arith.constant dense<0.000000e+00> : vector<2x4xf32>
    %143 = vector.multi_reduction <add>, %142, %cst_37 [2] : vector<2x4x2xf32> to vector<2x4xf32>
    %144 = vector.broadcast %127 : vector<1x4xf32> to vector<2x4xf32>
    %145 = arith.addf %143, %144 : vector<2x4xf32>
    %146 = arith.negf %145 : vector<2x4xf32>
    %147 = math.exp %146 : vector<2x4xf32>
    %cst_38 = arith.constant 1.000000e+00 : f32
    %148 = vector.broadcast %cst_38 : f32 to vector<2x4xf32>
    %149 = arith.addf %148, %147 : vector<2x4xf32>
    %150 = arith.divf %148, %149 : vector<2x4xf32>
    %151 = vector.shape_cast %57 : vector<2x4xf32> to vector<2x4x1xf32>
    %152 = vector.extract_strided_slice %1 {offsets = [0, 0], sizes = [1, 128], strides = [1, 1]} : vector<4x128xf32> to vector<1x128xf32>
    %153 = vector.shape_cast %152 : vector<1x128xf32> to vector<1x1x128xf32>
    %154 = vector.broadcast %151 : vector<2x4x1xf32> to vector<2x4x128xf32>
    %155 = vector.broadcast %153 : vector<1x1x128xf32> to vector<2x4x128xf32>
    %156 = arith.mulf %154, %155 : vector<2x4x128xf32>
    %157 = vector.shape_cast %88 : vector<2x4xf32> to vector<2x4x1xf32>
    %158 = vector.extract_strided_slice %1 {offsets = [1, 0], sizes = [1, 128], strides = [1, 1]} : vector<4x128xf32> to vector<1x128xf32>
    %159 = vector.shape_cast %158 : vector<1x128xf32> to vector<1x1x128xf32>
    %160 = vector.broadcast %157 : vector<2x4x1xf32> to vector<2x4x128xf32>
    %161 = vector.broadcast %159 : vector<1x1x128xf32> to vector<2x4x128xf32>
    %162 = arith.mulf %160, %161 : vector<2x4x128xf32>
    %163 = arith.addf %156, %162 : vector<2x4x128xf32>
    %164 = vector.shape_cast %119 : vector<2x4xf32> to vector<2x4x1xf32>
    %165 = vector.extract_strided_slice %1 {offsets = [2, 0], sizes = [1, 128], strides = [1, 1]} : vector<4x128xf32> to vector<1x128xf32>
    %166 = vector.shape_cast %165 : vector<1x128xf32> to vector<1x1x128xf32>
    %167 = vector.broadcast %164 : vector<2x4x1xf32> to vector<2x4x128xf32>
    %168 = vector.broadcast %166 : vector<1x1x128xf32> to vector<2x4x128xf32>
    %169 = arith.mulf %167, %168 : vector<2x4x128xf32>
    %170 = arith.addf %163, %169 : vector<2x4x128xf32>
    %171 = vector.shape_cast %150 : vector<2x4xf32> to vector<2x4x1xf32>
    %172 = vector.extract_strided_slice %1 {offsets = [3, 0], sizes = [1, 128], strides = [1, 1]} : vector<4x128xf32> to vector<1x128xf32>
    %173 = vector.shape_cast %172 : vector<1x128xf32> to vector<1x1x128xf32>
    %174 = vector.broadcast %171 : vector<2x4x1xf32> to vector<2x4x128xf32>
    %175 = vector.broadcast %173 : vector<1x1x128xf32> to vector<2x4x128xf32>
    %176 = arith.mulf %174, %175 : vector<2x4x128xf32>
    %177 = arith.addf %170, %176 : vector<2x4x128xf32>
    %178 = vector.shape_cast %177 : vector<2x4x128xf32> to vector<2x4x1x128xf32>
    %179 = vector.broadcast %178 : vector<2x4x1x128xf32> to vector<2x4x2x128xf32>
    %180 = arith.mulf %0, %179 : vector<2x4x2x128xf32>
    %c0_39 = arith.constant 0 : index
    %c0_40 = arith.constant 0 : index
    %c0_41 = arith.constant 0 : index
    %c0_42 = arith.constant 0 : index
    %181 = vector.load %arg7[%c0_39, %c0_40, %c0_41, %c0_42] : memref<2x4x2x128xf32, #tpu.memory_space<vmem>>, vector<2x4x2x128xf32>
    tpu.vector_store %arg7[%c0_39, %c0_40, %c0_41, %c0_42], %180 {strides = array<i32>} : memref<2x4x2x128xf32, #tpu.memory_space<vmem>>, vector<2x4x2x128xf32>,
    return
  }
  func.func @transform_0(%arg0: i32) -> (i32, i32) {
    %c0_i32 = arith.constant 0 : i32
    %c0_i32_0 = arith.constant 0 : i32
    %c0_i32_1 = arith.constant 0 : i32
    return %c0_i32, %c0_i32_0 : i32, i32
  }
  func.func @transform_1(%arg0: i32) -> (i32, i32, i32) {
    %c0_i32 = arith.constant 0 : i32
    %c0_i32_0 = arith.constant 0 : i32
    %c0_i32_1 = arith.constant 0 : i32
    %c0_i32_2 = arith.constant 0 : i32
    return %c0_i32, %c0_i32_0, %c0_i32_1 : i32, i32, i32
  }
  func.func @transform_2(%arg0: i32) -> (i32, i32) {
    %c0_i32 = arith.constant 0 : i32
    %c0_i32_0 = arith.constant 0 : i32
    %c0_i32_1 = arith.constant 0 : i32
    return %c0_i32, %c0_i32_0 : i32, i32
  }
  func.func @transform_3(%arg0: i32) -> (i32, i32, i32) {
    %c0_i32 = arith.constant 0 : i32
    %c0_i32_0 = arith.constant 0 : i32
    %c0_i32_1 = arith.constant 0 : i32
    %c0_i32_2 = arith.constant 0 : i32
    return %c0_i32, %c0_i32_0, %c0_i32_1 : i32, i32, i32
  }
  func.func @transform_4(%arg0: i32) -> (i32, i32) {
    %c0_i32 = arith.constant 0 : i32
    %c0_i32_0 = arith.constant 0 : i32
    %c0_i32_1 = arith.constant 0 : i32
    return %c0_i32, %c0_i32_0 : i32, i32
  }
  func.func @transform_5(%arg0: i32) -> (i32, i32, i32, i32) {
    %c0_i32 = arith.constant 0 : i32
    %c0_i32_0 = arith.constant 0 : i32
    %c0_i32_1 = arith.constant 0 : i32
    %c0_i32_2 = arith.constant 0 : i32
    %c0_i32_3 = arith.constant 0 : i32
    return %c0_i32, %c0_i32_0, %c0_i32_1, %c0_i32_2 : i32, i32, i32, i32
  }
  func.func @transform_6(%arg0: i32) -> (i32, i32, i32, i32) {
    %c0_i32 = arith.constant 0 : i32
    %c0_i32_0 = arith.constant 0 : i32
    %c0_i32_1 = arith.constant 0 : i32
    %c0_i32_2 = arith.constant 0 : i32
    %c0_i32_3 = arith.constant 0 : i32
    return %c0_i32, %c0_i32_0, %c0_i32_1, %c0_i32_2 : i32, i32, i32, i32
  }
}

</mosaic_0001>

<bundles_post_ra>
// kernel: tpu_custom_call.1
= control target key start
LH: loop header
LB: loop body
LE: loop exit
PB: predicated region body
PF: predicated region fallthrough
CT: control target
= control target key end

     0   :  { %11 = vsyncpa [#allocation3], 0  ;;  %s1885_s0 = inlined_call_operand.hbm [shape: f32[4,128], index: 0, kind: input, shape index: {}]   ;;  %s1886_s1 = inlined_call_operand.vmem [shape: f32[4,2,4], index: 1, kind: input, shape index: {}]   ;;  %s1887_s2 = inlined_call_operand.vmem [shape: f32[4,2], index: 2, kind: input, shape index: {}]   ;;  %s1888_s3 = inlined_call_operand.vmem [shape: f32[4,4,2], index: 3, kind: input, shape index: {}]   ;;  %s1889_s4 = inlined_call_operand.hbm [shape: f32[4,4], index: 4, kind: input, shape index: {}]   ;;  %s1890_s5 = inlined_call_operand.vmem [shape: f32[2,4,2,128], index: 5, kind: input, shape index: {}]   ;;  %s1891_s6 = inlined_call_operand.hbm [shape: f32[2,4,2,128], index: 6, kind: output, shape index: {}]  }
   0x1   :  { %12 = vsyncpa [#allocation6], 0 }
   0x2   :  { %13 = vsyncpa [#allocation4], 0  ;;  %s19_s23 = sshll.u32 %s1885_s0, 4  ;;  %s1388_s24 = smov [#allocation2]   ;;  %s20_s23 = int_to_ptr.hbm [resolvable:$true] %s19_s23 }
   0x3   :  { %s21_s25 = sshll.u32 %s1388_s24, 4  ;;  %s36_s28 = sshll.u32 %s1889_s4, 4  ;;  %s22_s25 = int_to_ptr.vmem [resolvable:$true] %s21_s25  ;;  %s37_s28 = int_to_ptr.hbm [resolvable:$true] %s36_s28 }
   0x4   :  { %24 = dma.hbm_to_vmem [thread:$0]  %s20_s23, 64, %s22_s25, [#allocation3]  }
   0x5   :  { %s1389_s29 = smov [#allocation5]  }
   0x6   :  { %s38_s30 = sshll.u32 %s1389_s29, 4  ;;  %s39_s30 = int_to_ptr.vmem [resolvable:$true] %s38_s30 }
   0x7   :  { %41 = dma.hbm_to_vmem [thread:$0]  %s37_s28, 64, %s39_s30, [#allocation6]  }
   0x8   :  { %1382 = dma.done.wait [#allocation3], 64  }
   0x9   :  { %1383 = vsyncadd [#allocation3], 4294967232 }
   0xa   :  { %1384 = dma.done.wait [#allocation6], 64  }
   0xb   :  { %1385 = vsyncadd [#allocation6], 4294967232  ;;  %vm71_vm0 = vcmask 1041408   ;;  %v52_v0 = vld [vmem:[%s1890_s5] sm:$0x3]  ;;  %vm146_vm1 = vcmask 1041409  }
   0xc   :  { %v53_v1 = vld [vmem:[%s1890_s5 + $0x2] sm:$0x3]  ;;  %v54_v2 = vld [vmem:[%s1890_s5 + $0x4] sm:$0x3]  ;;  %v55_v3 = vld [vmem:[%s1890_s5 + $0x6] sm:$0x3] }
   0xd   :  { %v1447_v4 = vld [vmem:[#allocation2] sm:$0xf]  ;;  %v72_v5 = vsel %vm71_vm0, %v52_v0, 0.0  ;;  %v79_v6 = vsel %vm71_vm0, %v53_v1, 0.0  ;;  %v86_v9 = vsel %vm71_vm0, %v54_v2, 0.0  ;;  %v93_v10 = vsel %vm71_vm0, %v55_v3, 0.0 }
   0xe   :  { %v73_v7 = vrot.slane %v72_v5, 4  ;;  %v80_v8 = vrot.slane %v79_v6, 4  ;;  %v56_v11 = vld [vmem:[%s1890_s5 + $0x8] sm:$0x3]  ;;  %v87_v12 = vrot.slane %v86_v9, 4  ;;  %v94_v13 = vrot.slane %v93_v10, 4 }
   0xf   :  { %v1457_v14 = vperm.slane %v1447_v4, 2  ;;  %v1460_v15 = vperm.slane %v1447_v4, 1  ;;  %v57_v16 = vld [vmem:[%s1890_s5 + $0xa] sm:$0x3]  ;;  %v1466_v19 = vperm.slane %v1447_v4, 0  ;;  %v100_v21 = vsel %vm71_vm0, %v56_v11, 0.0 }
  0x10   :  { %v74_v17 = vadd.f32 %v73_v7, %v72_v5  ;;  %v81_v18 = vadd.f32 %v80_v8, %v79_v6  ;;  %v58_v20 = vld [vmem:[%s1890_s5 + $0xc] sm:$0x3]  ;;  %v88_v22 = vadd.f32 %v87_v12, %v86_v9  ;;  %v95_v23 = vadd.f32 %v94_v13, %v93_v10  ;;  %v59_v24 = vld [vmem:[%s1890_s5 + $0xe] sm:$0x3]  ;;  %s1391_s20 = smov [#allocation7]   ;;  %s1224_s24 = sshll.u32 %s1891_s6, 4  ;;  %s1225_s24 = int_to_ptr.hbm [resolvable:$true] %s1224_s24 }
  0x11   :  { %v101_v25 = vrot.slane %v100_v21, 4  ;;  %v107_v26 = vsel %vm71_vm0, %v57_v16, 0.0  ;;  %v114_v30 = vsel %vm71_vm0, %v58_v20, 0.0  ;;  %vm149_vm2 = vcmask 1042434   ;;  %s1222_s21 = sshll.u32 %s1391_s20, 4  ;;  %s1392_s6 = smov 32   ;;  %s1223_s21 = int_to_ptr.vmem [resolvable:$true] %s1222_s21 }
  0x12   :  { %v75_v27 = vrot.slane %v74_v17, 2  ;;  %v82_v28 = vrot.slane %v81_v18, 2  ;;  %v108_v29 = vrot.slane %v107_v26, 4  ;;  %v89_v31 = vrot.slane %v88_v22, 2  ;;  %s1393_s30 = smov 2  }
  0x13   :  { %v96_v32 = vrot.slane %v95_v23, 2  ;;  %v102_v33 = vadd.f32 %v101_v25, %v100_v21  ;;  %v115_v34 = vrot.slane %v114_v30, 4  ;;  %v121_v38 = vsel %vm71_vm0, %v59_v24, 0.0 }
  0x14   :  { %v76_v35 = vadd.f32 %v75_v27, %v74_v17  ;;  %v83_v36 = vadd.f32 %v82_v28, %v81_v18  ;;  %v109_v37 = vadd.f32 %v108_v29, %v107_v26  ;;  %v90_v39 = vadd.f32 %v89_v31, %v88_v22 }
  0x15   :  { %v97_v40 = vadd.f32 %v96_v32, %v95_v23  ;;  %vm152_vm3 = vcmask 1043459   ;;  %v103_v41 = vrot.slane %v102_v33, 2  ;;  %v116_v42 = vadd.f32 %v115_v34, %v114_v30 }
  0x16   :  { %v77_v43 = vrot.slane %v76_v35, 1  ;;  %v84_v44 = vrot.slane %v83_v36, 1  ;;  %vm162_vm4 = vcmask 1043456   ;;  %v110_v45 = vrot.slane %v109_v37, 2 }
  0x17   :  { %v122_v46 = vrot.slane %v121_v38, 4  ;;  %v91_v47 = vrot.slane %v90_v39, 1  ;;  %v98_v48 = vrot.slane %v97_v40, 1  ;;  %v104_v49 = vadd.f32 %v103_v41, %v102_v33 }
  0x18   :  { %v117_v50 = vrot.slane %v116_v42, 2  ;;  %v1478_v51 = vadd.f32 %v77_v43, %v76_v35  ;;  %v1480_v52 = vadd.f32 %v84_v44, %v83_v36  ;;  %v111_v53 = vadd.f32 %v110_v45, %v109_v37 }
  0x19   :  { %v123_v54 = vadd.f32 %v122_v46, %v121_v38  ;;  %v1482_v55 = vadd.f32 %v91_v47, %v90_v39  ;;  %v1484_v56 = vadd.f32 %v98_v48, %v97_v40  ;;  %v105_v57 = vrot.slane %v104_v49, 1 }
  0x1a   :  { %v118_v58 = vadd.f32 %v117_v50, %v116_v42  ;;  %v207_v59 = vmul.f32 %v1457_v14, %v1478_v51  ;;  %v208_v60 = vmul.f32 %v1457_v14, %v1480_v52  ;;  %v170_v61 = vmul.f32 %v1460_v15, %v1478_v51 }
  0x1b   :  { %v171_v62 = vmul.f32 %v1460_v15, %v1480_v52  ;;  %v209_v63 = vmul.f32 %v1457_v14, %v1482_v55  ;;  %v210_v0 = vmul.f32 %v1457_v14, %v1484_v56  ;;  %v172_v1 = vmul.f32 %v1460_v15, %v1482_v55 }
  0x1c   :  { %v173_v2 = vmul.f32 %v1460_v15, %v1484_v56  ;;  %v223_v3 = vrot.slane %v208_v60, 7  ;;  %v129_v6 = vmul.f32 %v1466_v19, %v1478_v51  ;;  %v130_v7 = vmul.f32 %v1466_v19, %v1480_v52 }
  0x1d   :  { %v186_v5 = vrot.slane %v171_v62, 7  ;;  %v225_v8 = vrot.slane %v209_v63, 6  ;;  %v227_v9 = vrot.slane %v210_v0, 5  ;;  %v188_v10 = vrot.slane %v172_v1, 6 }
  0x1e   :  { %v190_v11 = vrot.slane %v173_v2, 5  ;;  %v224_v12 = vsel %vm146_vm1, %v223_v3, %v207_v59  ;;  %v131_v16 = vmul.f32 %v1466_v19, %v1482_v55  ;;  %v132_v17 = vmul.f32 %v1466_v19, %v1484_v56 }
  0x1f   :  { %v187_v13 = vsel %vm146_vm1, %v186_v5, %v170_v61  ;;  %v226_v18 = vsel %vm149_vm2, %v225_v8, %v224_v12  ;;  %v145_v21 = vrot.slane %v130_v7, 7  ;;  %v1514_v22 = vadd.f32 %v105_v57, %v104_v49 }
  0x20   :  { %v189_v20 = vsel %vm149_vm2, %v188_v10, %v187_v13  ;;  %v228_v23 = vsel %vm152_vm3, %v227_v9, %v226_v18  ;;  %v148_v25 = vrot.slane %v131_v16, 6  ;;  %v151_v26 = vrot.slane %v132_v17, 5 }
  0x21   :  { %v191_v24 = vsel %vm152_vm3, %v190_v11, %v189_v20  ;;  %v237_v27 = vsel %vm162_vm4, %v228_v23, 0.0  ;;  %v147_v29 = vsel %vm146_vm1, %v145_v21, %v129_v6  ;;  %v112_v30 = vrot.slane %v111_v53, 1 }
  0x22   :  { %v200_v28 = vsel %vm162_vm4, %v191_v24, 0.0  ;;  %238 = vadd.xlane.f32.xlu2 %v237_v27  ;;  %v150_v31 = vsel %vm149_vm2, %v148_v25, %v147_v29  ;;  %v119_v32 = vrot.slane %v118_v58, 1  ;;  %v124_v33 = vrot.slane %v123_v54, 2  ;;  %v67_v29 = vld [vmem:[%s1888_s3 + $0x4] sm:$0xf] }
  0x23   :  { %201 = vadd.xlane.f32.xlu1 %v200_v28  ;;  %v211_v34 = vmul.f32 %v1457_v14, %v1514_v22  ;;  %v153_v35 = vsel %vm152_vm3, %v151_v26, %v150_v31  ;;  %v1525_v36 = vadd.f32 %v112_v30, %v111_v53  ;;  %v174_v37 = vmul.f32 %v1460_v15, %v1514_v22  ;;  %v61_v28 = vld [vmem:[%s1886_s1] sm:$0x3] }
  0x24   :  { %v133_v38 = vmul.f32 %v1466_v19, %v1514_v22  ;;  %v163_v39 = vsel %vm162_vm4, %v153_v35, 0.0  ;;  %v1532_v40 = vadd.f32 %v119_v32, %v118_v58  ;;  %v125_v41 = vadd.f32 %v124_v33, %v123_v54  ;;  %v1588_v33 = vld [vmem:[#allocation5] sm:$0xf] }
  0x25   :  { %v1535_v42 = vperm.slane %v1447_v4, 3  ;;  %164 = vadd.xlane.f32.xlu0 %v163_v39  ;;  %v212_v43 = vmul.f32 %v1457_v14, %v1525_v36  ;;  %v175_v44 = vmul.f32 %v1460_v15, %v1525_v36  ;;  %v134_v45 = vmul.f32 %v1466_v19, %v1525_v36 }
  0x26   :  { %v284_v46 = vlaneseq  ;;  %v126_v47 = vrot.slane %v125_v41, 1  ;;  %v213_v48 = vmul.f32 %v1457_v14, %v1532_v40  ;;  %v176_v49 = vmul.f32 %v1460_v15, %v1532_v40 }
  0x27   :  { %v135_v4 = vmul.f32 %v1466_v19, %v1532_v40  ;;  %v229_v50 = vrot.slane %v212_v43, 7  ;;  %v192_v53 = vrot.slane %v175_v44, 7  ;;  %v154_v54 = vrot.slane %v134_v45, 7 }
  0x28   :  { %v244_v57 = vmul.f32 %v1535_v42, %v1478_v51  ;;  %v127_v58 = vadd.f32 %v126_v47, %v125_v41  ;;  %v231_v59 = vrot.slane %v213_v48, 6  ;;  %v194_v60 = vrot.slane %v176_v49, 6 }
  0x29   :  { %v156_v61 = vrot.slane %v135_v4, 6  ;;  %v230_v62 = vsel %vm146_vm1, %v229_v50, %v211_v34  ;;  %v193_v63 = vsel %vm146_vm1, %v192_v53, %v174_v37  ;;  %v155_v0 = vsel %vm146_vm1, %v154_v54, %v133_v38  ;;  %v1598_v38 = vld [vmem:[%s1887_s2] sm:$0xf] }
  0x2a   :  { %v245_v1 = vmul.f32 %v1535_v42, %v1480_v52  ;;  %v214_v2 = vmul.f32 %v1457_v14, %v127_v58  ;;  %v232_v3 = vsel %vm149_vm2, %v231_v59, %v230_v62  ;;  %v177_v5 = vmul.f32 %v1460_v15, %v127_v58  ;;  %v66_v50 = vld [vmem:[%s1888_s3] sm:$0xf] }
  0x2b   :  { %v195_v51 = vsel %vm149_vm2, %v194_v60, %v193_v63  ;;  %v136_v6 = vmul.f32 %v1466_v19, %v127_v58  ;;  %v157_v7 = vsel %vm149_vm2, %v156_v61, %v155_v0  ;;  %v246_v8 = vmul.f32 %v1535_v42, %v1482_v55  ;;  %v63_v60 = vld [vmem:[%s1886_s1 + $0x4] sm:$0x3] }
  0x2c   :  { %v247_v9 = vmul.f32 %v1535_v42, %v1484_v56  ;;  %v233_v10 = vrot.slane %v214_v2, 5  ;;  %v196_v52 = vrot.slane %v177_v5, 5  ;;  %v260_v11 = vrot.slane %v245_v1, 7  ;;  %v1623_v2 = vld [vmem:[%s1886_s1 + $0x6] sm:$0x3] }
  0x2d   :  { %v1567_v12 = vshrl.u32 %v284_v46, 7  ;;  %v158_v13 = vrot.slane %v136_v6, 5  ;;  %v262_v16 = vrot.slane %v246_v8, 6  ;;  %v283_v30 = vperm.slane %v61_v28, 0 }
  0x2e   :  { %v234_v17 = vsel %vm152_vm3, %v233_v10, %v232_v3  ;;  %v197_v18 = vsel %vm152_vm3, %v196_v52, %v195_v51  ;;  %v261_v20 = vsel %vm146_vm1, %v260_v11, %v244_v57  ;;  %v264_v23 = vrot.slane %v247_v9, 5  ;;  %v68_v9 = vld [vmem:[%s1888_s3 + $0x8] sm:$0xf] }
  0x2f   :  { %1252 = vset.pattern.permute.xlu2 %v1567_v12  ;;  %1254 = vset.pattern.permute.xlu1 %v1567_v12  ;;  %v240_v55 = vsel %vm162_vm4, %v234_v17, 0.0  ;;  %v203_v56 = vsel %vm162_vm4, %v197_v18, 0.0  ;;  %v159_v21 = vsel %vm152_vm3, %v158_v13, %v157_v7  ;;  %v263_v25 = vsel %vm149_vm2, %v262_v16, %v261_v20 }
  0x30   :  { %1253 = vset.pattern.permute.xlu0 %v1567_v12  ;;  %241 = vadd.xlane.f32.xlu2 %v240_v55  ;;  %v166_v24 = vsel %vm162_vm4, %v159_v21, 0.0  ;;  %v265_v26 = vsel %vm152_vm3, %v264_v23, %v263_v25  ;;  %v561_v31 = vperm.slane %v67_v29, 0  ;;  %v290_v32 = vperm.slane %v61_v28, 1 }
  0x31   :  { %204 = vadd.xlane.f32.xlu1 %v203_v56  ;;  %167 = vadd.xlane.f32.xlu0 %v166_v24  ;;  %v274_v27 = vsel %vm162_vm4, %v265_v26, 0.0  ;;  %v445_v34 = vperm.slane %v1588_v33, 0  ;;  %v249_v35 = vmul.f32 %v1535_v42, %v1525_v36  ;;  %v250_v37 = vmul.f32 %v1535_v42, %v1532_v40  ;;  %v62_v40 = vld [vmem:[%s1886_s1 + $0x2] sm:$0x3] }
  0x32   :  { %v248_v39 = vmul.f32 %v1535_v42, %v1514_v22  ;;  %v251_v41 = vmul.f32 %v1535_v42, %v127_v58  ;;  %v336_v47 = vperm.slane %v1598_v38, 0  ;;  %v497_v4 = vperm.slane %v62_v40, 0 }
  0x33   :  { %v266_v43 = vrot.slane %v249_v35, 7  ;;  %v268_v44 = vrot.slane %v250_v37, 6  ;;  %v350_v53 = vperm.slane %v66_v50, 0  ;;  %v504_v54 = vperm.slane %v62_v40, 1 }
  0x34   :  { %v270_v36 = vrot.slane %v251_v41, 5  ;;  %v357_v57 = vperm.slane %v66_v50, 1  ;;  %v655_v58 = vperm.slane %v1588_v33, 1  ;;  %v364_v59 = vperm.slane %v66_v50, 2 }
  0x35   :  { %v267_v45 = vsel %vm146_vm1, %v266_v43, %v248_v39  ;;  %v707_v61 = vperm.slane %v63_v60, 0  ;;  %v371_v62 = vperm.slane %v66_v50, 3  ;;  %v714_v63 = vperm.slane %v63_v60, 1 }
  0x36   :  { %v269_v48 = vsel %vm149_vm2, %v268_v44, %v267_v45  ;;  %v547_v0 = vperm.slane %v1598_v38, 1  ;;  %v757_v1 = vperm.slane %v1598_v38, 2  ;;  %v568_v3 = vperm.slane %v67_v29, 1 }
  0x37   :  { %v271_v49 = vsel %vm152_vm3, %v270_v36, %v269_v48  ;;  %v917_v5 = vperm.slane %v1623_v2, 0  ;;  %v575_v51 = vperm.slane %v67_v29, 2  ;;  %v1390_v6 = vmov 0  }
  0x38   :  { %v277_v22 = vsel %vm162_vm4, %v271_v49, 0.0  ;;  %v582_v7 = vperm.slane %v67_v29, 3  ;;  %v771_v10 = vperm.slane %v68_v9, 0  ;;  %v778_v13 = vperm.slane %v68_v9, 1 }
  0x39   :  { %275 = vadd.xlane.f32.xlu0 %v274_v27  ;;  %v785_v49 = vperm.slane %v68_v9, 2  ;;  %v924_v60 = vperm.slane %v1623_v2, 1  ;;  %vm329_vm5 = vcmask 25600   ;;  %vm438_vm6 = vcmask 11264  }
  0x48   :  { %288 = vperm.xlu2 %1252, %v283_v30  }
  0x4a   :  { %566 = vperm.xlu1 %1254, %v561_v31  }
  0x4d   :  { %295 = vperm.xlu0 %1253, %v290_v32  }
  0x50   :  { %451 = vperm.xlu2 %1252, %v445_v34  }
  0x55   :  { %342 = vperm.xlu0 %1253, %v336_v47  }
  0x58   :  { %502 = vperm.xlu2 %1252, %v497_v4  }
  0x5d   :  { %355 = vperm.xlu0 %1253, %v350_v53   ;;  %v792_v53 = vperm.slane %v68_v9, 3 }
  0x60   :  { %509 = vperm.xlu2 %1252, %v504_v54  }
  0x65   :  { %362 = vperm.xlu0 %1253, %v357_v57  }
  0x68   :  { %661 = vperm.xlu2 %1252, %v655_v58  }
  0x6d   :  { %369 = vperm.xlu0 %1253, %v364_v59  }
  0x70   :  { %712 = vperm.xlu2 %1252, %v707_v61  }
  0x74   :  { %278 = vadd.xlane.f32.xlu1 %v277_v22 }
  0x75   :  { %376 = vperm.xlu0 %1253, %v371_v62  }
  0x78   :  { %719 = vperm.xlu2 %1252, %v714_v63  }
  0x7d   :  { %553 = vperm.xlu0 %1253, %v547_v0  }
  0x80   :  { %1256 = vset.pattern.permute.xlu2 %v1390_v6 }
  0x85   :  { %763 = vperm.xlu0 %1253, %v757_v1  }
  0x8d   :  { %573 = vperm.xlu1 %1254, %v568_v3   ;;  %922 = vperm.xlu0 %1253, %v917_v5  }
  0x95   :  { %580 = vperm.xlu1 %1254, %v575_v51   ;;  %1259 = vset.pattern.permute.xlu0 %v1390_v6  ;;  %v239_v8 = vpop.xlane.xlu2 %238 }
  0x96   :  { %v202_v21 = vpop.xlane.xlu1 %201  ;;  %v704_v22 = vmul.f32 0.015625, %v239_v8 }
  0x97   :  { %v494_v37 = vmul.f32 0.015625, %v202_v21 }
  0x98   :  { %v165_v52 = vpop.xlane.xlu0 %164 }
  0x99   :  { %v280_v18 = vmul.f32 0.015625, %v165_v52 }
  0x9d   :  { %587 = vperm.xlu1 %1254, %v582_v7  }
  0xa3   :  { %v242_v11 = vpop.xlane.xlu2 %241 }
  0xa4   :  { %v168_v17 = vpop.xlane.xlu0 %167  ;;  %v205_v28 = vpop.xlane.xlu1 %204  ;;  %v705_v43 = vmul.f32 0.015625, %v242_v11 }
  0xa5   :  { %776 = vperm.xlu1 %1254, %v771_v10   ;;  %v281_v24 = vmul.f32 0.015625, %v168_v17  ;;  %v495_v30 = vmul.f32 0.015625, %v205_v28  ;;  %v1666_v10 = vand.u32 127, %v284_v46 }
  0xab   :  { %v289_v16 = vpop.permute.xlu2 %288 }
  0xac   :  { %v299_v20 = vmul.f32 %v289_v16, %v280_v18  ;;  %v276_v56 = vpop.xlane.xlu0 %275  ;;  %v301_v32 = vmul.f32 %v289_v16, %v281_v24 }
  0xad   :  { %783 = vperm.xlu1 %1254, %v778_v13   ;;  %v914_v0 = vmul.f32 0.015625, %v276_v56 }
  0xb3   :  { %v1631_v55 = vpop.permute.xlu2 %451 }
  0xb5   :  { %1255 = vset.pattern.permute.xlu1 %v1390_v6 }
  0xb6   :  { %308 = vperm.xlu1 %1255, %v299_v20  }
  0xbb   :  { %v503_v23 = vpop.permute.xlu2 %502 }
  0xbc   :  { %v515_v34 = vmul.f32 %v503_v23, %v495_v30  ;;  %v513_v41 = vmul.f32 %v503_v23, %v494_v37  ;;  %v1647_v57 = vpop.permute.xlu1 %566 }
  0xbf   :  { %v296_v25 = vpop.permute.xlu0 %295 }
  0xc0   :  { %v300_v26 = vmul.f32 %v296_v25, %v280_v18  ;;  %v302_v27 = vmul.f32 %v296_v25, %v281_v24 }
  0xc2   :  { %317 = vperm.xlu1 %1255, %v302_v27   ;;  %311 = vperm.xlu2 %1256, %v300_v26  }
  0xc3   :  { %v510_v29 = vpop.permute.xlu2 %509 }
  0xc4   :  { %v514_v47 = vmul.f32 %v510_v29, %v494_v37  ;;  %v516_v48 = vmul.f32 %v510_v29, %v495_v30 }
  0xc7   :  { %v1634_v31 = vpop.permute.xlu0 %342 }
  0xca   :  { %528 = vperm.xlu1 %1255, %v515_v34   ;;  %314 = vperm.xlu2 %1256, %v301_v32  }
  0xcb   :  { %v1636_v35 = vpop.permute.xlu2 %661 }
  0xcf   :  { %v1638_v39 = vpop.permute.xlu0 %355 }
  0xd2   :  { %522 = vperm.xlu2 %1256, %v513_v41  }
  0xd3   :  { %v713_v44 = vpop.permute.xlu2 %712 }
  0xd4   :  { %v725_v45 = vmul.f32 %v713_v44, %v705_v43  ;;  %v723_v50 = vmul.f32 %v713_v44, %v704_v22 }
  0xd6   :  { %738 = vperm.xlu1 %1255, %v725_v45  }
  0xd7   :  { %v1640_v36 = vpop.permute.xlu0 %362 }
  0xda   :  { %525 = vperm.xlu2 %1256, %v514_v47  }
  0xdb   :  { %v720_v54 = vpop.permute.xlu2 %719 }
  0xdc   :  { %v724_v59 = vmul.f32 %v720_v54, %v704_v22  ;;  %v726_v63 = vmul.f32 %v720_v54, %v705_v43 }
  0xde   :  { %1257 = vset.pattern.permute.xlu1 %v1567_v12 }
  0xdf   :  { %v1643_v40 = vpop.permute.xlu0 %369 }
  0xe2   :  { %531 = vperm.xlu2 %1256, %v516_v48  }
  0xe6   :  { %790 = vperm.xlu1 %1257, %v785_v49  }
  0xe7   :  { %v1645_v4 = vpop.permute.xlu0 %376  ;;  %v279_v61 = vpop.xlane.xlu1 %278 }
  0xea   :  { %732 = vperm.xlu2 %1256, %v723_v50  }
  0xee   :  { %797 = vperm.xlu1 %1257, %v792_v53  }
  0xef   :  { %v1649_v58 = vpop.permute.xlu0 %553 }
  0xf2   :  { %735 = vperm.xlu2 %1256, %v724_v59  }
  0xf6   :  { %929 = vperm.xlu1 %1257, %v924_v60  }
  0xf7   :  { %v1652_v62 = vpop.permute.xlu0 %763 }
  0xfa   :  { %741 = vperm.xlu2 %1256, %v726_v63  }
  0xfe   :  { %1258 = vset.pattern.permute.xlu1 %v1390_v6 }
  0xff   :  { %v1654_v1 = vpop.permute.xlu1 %573  ;;  %v923_v3 = vpop.permute.xlu0 %922 }
 0x100   :  { %v933_v5 = vmul.f32 %v923_v3, %v914_v0 }
 0x102   :  { %942 = vperm.xlu1 %1258, %v933_v5  }
 0x107   :  { %v1657_v51 = vpop.permute.xlu1 %580 }
 0x10f   :  { %v1659_v7 = vpop.permute.xlu1 %587 }
 0x117   :  { %v1661_v8 = vpop.permute.xlu1 %776 }
 0x11c   :  { %v312_v2 = vpop.permute.xlu2 %311 }
 0x11d   :  { %v322_v13 = vperm.slane %v312_v2, %v1666_v10 }
 0x11f   :  { %v1663_v9 = vpop.permute.xlu1 %783 }
 0x124   :  { %v315_v52 = vpop.permute.xlu2 %314 }
 0x125   :  { %v323_v23 = vperm.slane %v315_v52, %v1666_v10  ;;  %v915_v52 = vmul.f32 0.015625, %v279_v61 }
 0x128   :  { %v309_v11 = vpop.permute.xlu1 %308 }
 0x129   :  { %v321_v16 = vperm.slane %v309_v11, %v1666_v10  ;;  %v935_v11 = vmul.f32 %v923_v3, %v915_v52 }
 0x12b   :  { %v325_v17 = vsel %vm146_vm1, %v322_v13, %v321_v16 }
 0x12c   :  { %v330_v18 = vsel %vm329_vm5, %v325_v17, 0.0  ;;  %v523_v20 = vpop.permute.xlu2 %522 }
 0x12d   :  { %331 = vadd.xlane.f32.xlu2 %v330_v18  ;;  %v533_v46 = vperm.slane %v523_v20, %v1666_v10 }
 0x134   :  { %v318_v56 = vpop.permute.xlu1 %317  ;;  %v526_v21 = vpop.permute.xlu2 %525 }
 0x135   :  { %v324_v24 = vperm.slane %v318_v56, %v1666_v10  ;;  %v534_v25 = vperm.slane %v526_v21, %v1666_v10 }
 0x137   :  { %v537_v26 = vsel %vm146_vm1, %v534_v25, %v533_v46  ;;  %v326_v27 = vsel %vm146_vm1, %v324_v24, %v323_v23 }
 0x138   :  { %v541_v28 = vsel %vm329_vm5, %v537_v26, 0.0  ;;  %v333_v29 = vsel %vm329_vm5, %v326_v27, 0.0 }
 0x139   :  { %542 = vadd.xlane.f32.xlu0 %v541_v28  ;;  %334 = vadd.xlane.f32.xlu1 %v333_v29 }
 0x13c   :  { %v529_v30 = vpop.permute.xlu1 %528  ;;  %v532_v32 = vpop.permute.xlu2 %531 }
 0x13d   :  { %v535_v34 = vperm.slane %v529_v30, %v1666_v10  ;;  %v536_v37 = vperm.slane %v532_v32, %v1666_v10 }
 0x13f   :  { %v538_v41 = vsel %vm146_vm1, %v536_v37, %v535_v34 }
 0x140   :  { %v544_v43 = vsel %vm329_vm5, %v538_v41, 0.0 }
 0x141   :  { %545 = vadd.xlane.f32.xlu2 %v544_v43 }
 0x144   :  { %v733_v44 = vpop.permute.xlu2 %732 }
 0x145   :  { %v743_v47 = vperm.slane %v733_v44, %v1666_v10 }
 0x148   :  { %v739_v22 = vpop.permute.xlu1 %738 }
 0x149   :  { %v745_v54 = vperm.slane %v739_v22, %v1666_v10 }
 0x14c   :  { %v736_v45 = vpop.permute.xlu2 %735 }
 0x14d   :  { %v744_v48 = vperm.slane %v736_v45, %v1666_v10 }
 0x14f   :  { %v747_v49 = vsel %vm146_vm1, %v744_v48, %v743_v47 }
 0x150   :  { %v751_v50 = vsel %vm329_vm5, %v747_v49, 0.0 }
 0x151   :  { %752 = vadd.xlane.f32.xlu0 %v751_v50 }
 0x154   :  { %v742_v53 = vpop.permute.xlu2 %741 }
 0x155   :  { %v746_v59 = vperm.slane %v742_v53, %v1666_v10 }
 0x157   :  { %v748_v60 = vsel %vm146_vm1, %v746_v59, %v745_v54 }
 0x158   :  { %v1691_v63 = vpop.permute.xlu1 %790  ;;  %v754_v5 = vsel %vm329_vm5, %v748_v60, 0.0  ;;  %v967_v60 = vperm.slane %v1598_v38, 3 }
 0x159   :  { %755 = vadd.xlane.f32.xlu2 %v754_v5 }
 0x160   :  { %v1694_v2 = vpop.permute.xlu1 %797 }
 0x165   :  { %948 = vperm.xlu0 %1259, %v935_v11  }
 0x168   :  { %v930_v13 = vpop.permute.xlu1 %929 }
 0x169   :  { %v936_v16 = vmul.f32 %v930_v13, %v915_v52  ;;  %v934_v17 = vmul.f32 %v930_v13, %v914_v0 }
 0x16b   :  { %951 = vperm.xlu1 %1258, %v936_v16  }
 0x171   :  { %945 = vperm.xlu2 %1256, %v934_v17  }
 0x174   :  { %v1697_v21 = vpop.permute.xlu1 %942 }
 0x175   :  { %v953_v17 = vperm.slane %v1697_v21, %v1666_v10 }
 0x1a0   :  { %v332_v18 = vpop.xlane.xlu2 %331 }
 0x1a1   :  { %v345_v20 = vadd.f32 %v1634_v31, %v332_v18 }
 0x1a3   :  { %v347_v56 = vmax.f32 %v345_v20, 0.0 }
 0x1a5   :  { %v382_v23 = vmul.f32 %v1638_v39, %v347_v56  ;;  %v384_v46 = vmul.f32 %v1643_v40, %v347_v56  ;;  %v383_v24 = vmul.f32 %v1640_v36, %v347_v56  ;;  %v385_v3 = vmul.f32 %v1645_v4, %v347_v56 }
 0x1a7   :  { %399 = vperm.xlu2 %1256, %v382_v23   ;;  %405 = vperm.xlu0 %1259, %v384_v46  }
 0x1a8   :  { %402 = vperm.xlu1 %1258, %v383_v24  }
 0x1ac   :  { %v335_v61 = vpop.xlane.xlu1 %334  ;;  %v543_v25 = vpop.xlane.xlu0 %542 }
 0x1ad   :  { %v346_v0 = vadd.f32 %v1634_v31, %v335_v61  ;;  %v556_v27 = vadd.f32 %v1649_v58, %v543_v25 }
 0x1af   :  { %408 = vperm.xlu0 %1259, %v385_v3   ;;  %v348_v26 = vmax.f32 %v346_v0, 0.0  ;;  %v558_v32 = vmax.f32 %v556_v27, 0.0 }
 0x1b1   :  { %v387_v28 = vmul.f32 %v1640_v36, %v348_v26  ;;  %v386_v29 = vmul.f32 %v1638_v39, %v348_v26  ;;  %v388_v30 = vmul.f32 %v1643_v40, %v348_v26  ;;  %v389_v37 = vmul.f32 %v1645_v4, %v348_v26 }
 0x1b2   :  { %v595_v31 = vmul.f32 %v1657_v51, %v558_v32  ;;  %v593_v43 = vmul.f32 %v1647_v57, %v558_v32  ;;  %v596_v39 = vmul.f32 %v1659_v7, %v558_v32  ;;  %v594_v44 = vmul.f32 %v1654_v1, %v558_v32 }
 0x1b3   :  { %414 = vperm.xlu1 %1258, %v387_v28   ;;  %411 = vperm.xlu2 %1256, %v386_v29  }
 0x1b4   :  { %v546_v34 = vpop.xlane.xlu2 %545 }
 0x1b5   :  { %v557_v41 = vadd.f32 %v1649_v58, %v546_v34 }
 0x1b7   :  { %417 = vperm.xlu0 %1259, %v388_v30   ;;  %v559_v36 = vmax.f32 %v557_v41, 0.0 }
 0x1b9   :  { %v597_v40 = vmul.f32 %v1647_v57, %v559_v36  ;;  %v598_v47 = vmul.f32 %v1654_v1, %v559_v36  ;;  %v600_v58 = vmul.f32 %v1659_v7, %v559_v36  ;;  %v599_v48 = vmul.f32 %v1657_v51, %v559_v36 }
 0x1bb   :  { %420 = vperm.xlu2 %1256, %v389_v37   ;;  %616 = vperm.xlu1 %1258, %v595_v31  }
 0x1bf   :  { %610 = vperm.xlu0 %1259, %v593_v43  }
 0x1c3   :  { %619 = vperm.xlu1 %1258, %v596_v39   ;;  %613 = vperm.xlu2 %1256, %v594_v44  }
 0x1c4   :  { %v753_v45 = vpop.xlane.xlu0 %752 }
 0x1c5   :  { %v766_v4 = vadd.f32 %v1652_v62, %v753_v45 }
 0x1c7   :  { %622 = vperm.xlu0 %1259, %v597_v40   ;;  %v768_v49 = vmax.f32 %v766_v4, 0.0 }
 0x1c9   :  { %v805_v53 = vmul.f32 %v1691_v63, %v768_v49  ;;  %v803_v57 = vmul.f32 %v1661_v8, %v768_v49  ;;  %v804_v54 = vmul.f32 %v1663_v9, %v768_v49  ;;  %v806_v7 = vmul.f32 %v1694_v2, %v768_v49 }
 0x1cb   :  { %625 = vperm.xlu1 %1258, %v598_v47   ;;  %631 = vperm.xlu2 %1256, %v600_v58  }
 0x1cc   :  { %v756_v22 = vpop.xlane.xlu2 %755 }
 0x1cd   :  { %v767_v50 = vadd.f32 %v1652_v62, %v756_v22 }
 0x1cf   :  { %628 = vperm.xlu0 %1259, %v599_v48   ;;  %v769_v1 = vmax.f32 %v767_v50, 0.0 }
 0x1d1   :  { %v807_v59 = vmul.f32 %v1661_v8, %v769_v1  ;;  %v808_v51 = vmul.f32 %v1663_v9, %v769_v1  ;;  %v809_v62 = vmul.f32 %v1691_v63, %v769_v1  ;;  %v69_v8 = vld [vmem:[%s1888_s3 + $0xc] sm:$0xf]  ;;  %v810_v32 = vmul.f32 %v1694_v2, %v769_v1 }
 0x1d2   :  { %v1002_v5 = vperm.slane %v69_v8, 3  ;;  %v988_v24 = vperm.slane %v69_v8, 1  ;;  %v981_v29 = vperm.slane %v69_v8, 0  ;;  %v995_v44 = vperm.slane %v69_v8, 2 }
 0x1d3   :  { %826 = vperm.xlu1 %1258, %v805_v53   ;;  %820 = vperm.xlu2 %1256, %v803_v57  }
 0x1d4   :  { %v946_v11 = vpop.permute.xlu2 %945 }
 0x1d5   :  { %v954_v38 = vperm.slane %v946_v11, %v1666_v10 }
 0x1d7   :  { %823 = vperm.xlu0 %1259, %v804_v54   ;;  %v949_v63 = vpop.permute.xlu0 %948  ;;  %v957_v20 = vsel %vm146_vm1, %v954_v38, %v953_v17 }
 0x1d8   :  { %v955_v13 = vperm.slane %v949_v63, %v1666_v10  ;;  %v961_v56 = vsel %vm329_vm5, %v957_v20, 0.0 }
 0x1db   :  { %829 = vperm.xlu1 %1258, %v806_v7   ;;  %832 = vperm.xlu2 %1256, %v807_v59  }
 0x1dd   :  { %v952_v9 = vpop.permute.xlu1 %951 }
 0x1de   :  { %v956_v52 = vperm.slane %v952_v9, %v1666_v10 }
 0x1df   :  { %835 = vperm.xlu0 %1259, %v808_v51  }
 0x1e0   :  { %v958_v16 = vsel %vm146_vm1, %v956_v52, %v955_v13 }
 0x1e1   :  { %v964_v18 = vsel %vm329_vm5, %v958_v16, 0.0 }
 0x1e3   :  { %838 = vperm.xlu2 %1256, %v809_v62   ;;  %1260 = vset.pattern.permute.xlu1 %v1567_v12 }
 0x1e7   :  { %1262 = vset.pattern.permute.xlu0 %v1567_v12 }
 0x1eb   :  { %973 = vperm.xlu1 %1260, %v967_v60   ;;  %1261 = vset.pattern.permute.xlu2 %v1567_v12 }
 0x1f3   :  { %1007 = vperm.xlu1 %1260, %v1002_v5  }
 0x1fb   :  { %1265 = vset.pattern.permute.xlu1 %v1390_v6 }
 0x201   :  { %v400_v23 = vpop.permute.xlu2 %399 }
 0x202   :  { %v422_v0 = vperm.slane %v400_v23, %v1666_v10 }
 0x209   :  { %965 = vadd.xlane.f32.xlu0 %v964_v18 }
 0x20c   :  { %962 = vadd.xlane.f32.xlu2 %v961_v56 }
 0x20d   :  { %v412_v25 = vpop.permute.xlu2 %411 }
 0x20e   :  { %v426_v41 = vperm.slane %v412_v25, %v1666_v10 }
 0x215   :  { %v421_v37 = vpop.permute.xlu2 %420 }
 0x216   :  { %v429_v2 = vperm.slane %v421_v37, %v1666_v10 }
 0x219   :  { %v406_v46 = vpop.permute.xlu0 %405 }
 0x21a   :  { %v403_v61 = vpop.permute.xlu1 %402  ;;  %v424_v3 = vperm.slane %v406_v46, %v1666_v10 }
 0x21b   :  { %v423_v26 = vperm.slane %v403_v61, %v1666_v10 }
 0x21d   :  { %v430_v21 = vsel %vm146_vm1, %v423_v26, %v422_v0  ;;  %993 = vperm.xlu0 %1262, %v988_v24   ;;  %v614_v58 = vpop.permute.xlu2 %613 }
 0x21e   :  { %v431_v27 = vsel %vm149_vm2, %v424_v3, %v430_v21  ;;  %v634_v49 = vperm.slane %v614_v58, %v1666_v10 }
 0x221   :  { %v409_v28 = vpop.permute.xlu0 %408 }
 0x222   :  { %v425_v30 = vperm.slane %v409_v28, %v1666_v10 }
 0x224   :  { %v1752_v34 = vsel %vm152_vm3, %v425_v30, %v431_v27  ;;  %986 = vperm.xlu2 %1261, %v981_v29  }
 0x225   :  { %1263 = vset.pattern.permute.xlu0 %v1390_v6  ;;  %v415_v31 = vpop.permute.xlu1 %414  ;;  %v632_v51 = vpop.permute.xlu2 %631 }
 0x226   :  { %841 = vperm.xlu0 %1263, %v810_v32   ;;  %v427_v43 = vperm.slane %v415_v31, %v1666_v10  ;;  %v640_v52 = vperm.slane %v632_v51, %v1666_v10 }
 0x228   :  { %v433_v36 = vsel %vm146_vm1, %v427_v43, %v426_v41 }
 0x229   :  { %v418_v39 = vpop.permute.xlu0 %417 }
 0x22a   :  { %v428_v40 = vperm.slane %v418_v39, %v1666_v10 }
 0x22c   :  { %v434_v45 = vsel %vm149_vm2, %v428_v40, %v433_v36  ;;  %1000 = vperm.xlu2 %1261, %v995_v44  }
 0x22d   :  { %v1762_v4 = vsel %vm152_vm3, %v429_v2, %v434_v45  ;;  %v617_v47 = vpop.permute.xlu1 %616  ;;  %v821_v13 = vpop.permute.xlu2 %820 }
 0x22e   :  { %v635_v50 = vperm.slane %v617_v47, %v1666_v10  ;;  %v843_v18 = vperm.slane %v821_v13, %v1666_v10 }
 0x231   :  { %v611_v48 = vpop.permute.xlu0 %610 }
 0x232   :  { %v633_v22 = vperm.slane %v611_v48, %v1666_v10 }
 0x234   :  { %v641_v53 = vsel %vm146_vm1, %v634_v49, %v633_v22  ;;  %1264 = vset.pattern.permute.xlu2 %v1390_v6 }
 0x235   :  { %v642_v57 = vsel %vm149_vm2, %v635_v50, %v641_v53  ;;  %v620_v54 = vpop.permute.xlu1 %619  ;;  %v833_v61 = vpop.permute.xlu2 %832  ;;  %v442_v53 = vsel %vm438_vm6, %v1762_v4, 0.0 }
 0x236   :  { %v636_v1 = vperm.slane %v620_v54, %v1666_v10  ;;  %v847_v26 = vperm.slane %v833_v61, %v1666_v10  ;;  %v439_v54 = vsel %vm438_vm6, %v1752_v34, 0.0 }
 0x238   :  { %v1772_v59 = vsel %vm152_vm3, %v636_v1, %v642_v57 }
 0x239   :  { %v623_v7 = vpop.permute.xlu0 %622  ;;  %v649_v1 = vsel %vm438_vm6, %v1772_v59, 0.0 }
 0x23a   :  { %v637_v60 = vperm.slane %v623_v7, %v1666_v10  ;;  %v865_v7 = vperm.slane %v1588_v33, 2 }
 0x23d   :  { %v626_v62 = vpop.permute.xlu1 %625  ;;  %v839_v28 = vpop.permute.xlu2 %838 }
 0x23e   :  { %v638_v8 = vperm.slane %v626_v62, %v1666_v10  ;;  %v849_v62 = vperm.slane %v839_v28, %v1666_v10 }
 0x240   :  { %v644_v5 = vsel %vm146_vm1, %v638_v8, %v637_v60 }
 0x241   :  { %v629_v9 = vpop.permute.xlu0 %628 }
 0x242   :  { %v639_v63 = vperm.slane %v629_v9, %v1666_v10  ;;  %v1075_v9 = vperm.slane %v1588_v33, 3 }
 0x244   :  { %v645_v11 = vsel %vm149_vm2, %v639_v63, %v644_v5 }
 0x245   :  { %v646_v38 = vsel %vm152_vm3, %v640_v52, %v645_v11  ;;  %v827_v16 = vpop.permute.xlu1 %826 }
 0x246   :  { %v845_v56 = vperm.slane %v827_v16, %v1666_v10  ;;  %v652_v57 = vsel %vm438_vm6, %v646_v38, 0.0 }
 0x249   :  { %v824_v17 = vpop.permute.xlu0 %823 }
 0x24a   :  { %v844_v20 = vperm.slane %v824_v17, %v1666_v10 }
 0x24c   :  { %v851_v23 = vsel %vm146_vm1, %v844_v20, %v843_v18 }
 0x24d   :  { %v852_v46 = vsel %vm149_vm2, %v845_v56, %v851_v23  ;;  %v830_v24 = vpop.permute.xlu1 %829 }
 0x24e   :  { %v846_v3 = vperm.slane %v830_v24, %v1666_v10 }
 0x250   :  { %v853_v25 = vsel %vm152_vm3, %v846_v3, %v852_v46 }
 0x251   :  { %v836_v0 = vpop.permute.xlu0 %835 }
 0x252   :  { %v848_v21 = vperm.slane %v836_v0, %v1666_v10 }
 0x254   :  { %v854_v27 = vsel %vm146_vm1, %v848_v21, %v847_v26 }
 0x255   :  { %v855_v60 = vsel %vm149_vm2, %v849_v62, %v854_v27 }
 0x25d   :  { %v974_v30 = vpop.permute.xlu1 %973 }
 0x265   :  { %v1008_v49 = vpop.permute.xlu1 %1007 }
 0x27c   :  { %v966_v37 = vpop.xlane.xlu0 %965 }
 0x27d   :  { %v977_v36 = vadd.f32 %v974_v30, %v966_v37 }
 0x27f   :  { %v963_v29 = vpop.xlane.xlu2 %962  ;;  %v979_v39 = vmax.f32 %v977_v36, 0.0 }
 0x280   :  { %v976_v32 = vadd.f32 %v974_v30, %v963_v29 }
 0x281   :  { %v1020_v50 = vmul.f32 %v1008_v49, %v979_v39 }
 0x282   :  { %v978_v31 = vmax.f32 %v976_v32, 0.0 }
 0x284   :  { %v1016_v22 = vmul.f32 %v1008_v49, %v978_v31 }
 0x287   :  { %v987_v41 = vpop.permute.xlu2 %986 }
 0x288   :  { %v1013_v43 = vmul.f32 %v987_v41, %v978_v31  ;;  %v1017_v45 = vmul.f32 %v987_v41, %v979_v39 }
 0x28a   :  { %1030 = vperm.xlu2 %1264, %v1013_v43  }
 0x28f   :  { %v994_v44 = vpop.permute.xlu0 %993  ;;  %v1001_v40 = vpop.permute.xlu2 %1000 }
 0x290   :  { %v1014_v2 = vmul.f32 %v994_v44, %v978_v31  ;;  %v1015_v47 = vmul.f32 %v1001_v40, %v978_v31  ;;  %v1018_v58 = vmul.f32 %v994_v44, %v979_v39  ;;  %v1019_v48 = vmul.f32 %v1001_v40, %v979_v39 }
 0x292   :  { %1033 = vperm.xlu1 %1265, %v1014_v2   ;;  %1036 = vperm.xlu0 %1263, %v1015_v47  }
 0x293   :  { %1042 = vperm.xlu2 %1264, %v1017_v45  }
 0x298   :  { %v842_v51 = vpop.permute.xlu0 %841 }
 0x299   :  { %v850_v4 = vperm.slane %v842_v51, %v1666_v10 }
 0x29a   :  { %1045 = vperm.xlu1 %1265, %v1018_v58   ;;  %1266 = vset.pattern.permute.xlu0 %v1567_v12 }
 0x29b   :  { %1048 = vperm.xlu2 %1264, %v1019_v48   ;;  %v856_v34 = vsel %vm152_vm3, %v850_v4, %v855_v60 }
 0x29c   :  { %v862_v59 = vsel %vm438_vm6, %v856_v34, 0.0 }
 0x2a2   :  { %1039 = vperm.xlu1 %1265, %v1016_v22  }
 0x2a3   :  { %1051 = vperm.xlu2 %1264, %v1020_v50  }
 0x2aa   :  { %1267 = vset.pattern.permute.xlu1 %v1567_v12  ;;  %v859_v12 = vsel %vm438_vm6, %v853_v25, 0.0 }
 0x2bc   :  { %443 = vadd.xlane.f32.xlu0 %v442_v53 }
 0x2c4   :  { %653 = vadd.xlane.f32.xlu0 %v652_v57 }
 0x2cc   :  { %440 = vadd.xlane.f32.xlu1 %v439_v54 }
 0x2d4   :  { %650 = vadd.xlane.f32.xlu1 %v649_v1 }
 0x2d8   :  { %871 = vperm.xlu0 %1266, %v865_v7  }
 0x2dc   :  { %860 = vadd.xlane.f32.xlu1 %v859_v12 }
 0x2e0   :  { %1268 = vset.pattern.permute.xlu0 %v1390_v6 }
 0x2e4   :  { %863 = vadd.xlane.f32.xlu1 %v862_v59  ;;  %v1031_v8 = vpop.permute.xlu2 %1030 }
 0x2e5   :  { %v1053_v46 = vperm.slane %v1031_v8, %v1666_v10 }
 0x2ed   :  { %v1043_v5 = vpop.permute.xlu2 %1042 }
 0x2ee   :  { %v1057_v38 = vperm.slane %v1043_v5, %v1666_v10 }
 0x2f5   :  { %v1049_v63 = vpop.permute.xlu2 %1048 }
 0x2f6   :  { %v1059_v17 = vperm.slane %v1049_v63, %v1666_v10 }
 0x2fd   :  { %1081 = vperm.xlu1 %1267, %v1075_v9   ;;  %v1052_v11 = vpop.permute.xlu2 %1051 }
 0x2fe   :  { %v1060_v18 = vperm.slane %v1052_v11, %v1666_v10 }
 0x304   :  { %v1034_v52 = vpop.permute.xlu1 %1033  ;;  %v1037_v56 = vpop.permute.xlu0 %1036 }
 0x305   :  { %1269 = vset.pattern.permute.xlu1 %v1390_v6  ;;  %v1054_v20 = vperm.slane %v1034_v52, %v1666_v10  ;;  %v1055_v24 = vperm.slane %v1037_v56, %v1666_v10 }
 0x307   :  { %v1061_v3 = vsel %vm146_vm1, %v1054_v20, %v1053_v46 }
 0x308   :  { %v1062_v26 = vsel %vm149_vm2, %v1055_v24, %v1061_v3 }
 0x30c   :  { %v1046_v13 = vpop.permute.xlu1 %1045 }
 0x30d   :  { %v1058_v16 = vperm.slane %v1046_v13, %v1666_v10 }
 0x30f   :  { %v1064_v33 = vsel %vm146_vm1, %v1058_v16, %v1057_v38 }
 0x310   :  { %v1065_v23 = vsel %vm149_vm2, %v1059_v17, %v1064_v33 }
 0x311   :  { %v1066_v6 = vsel %vm152_vm3, %v1060_v18, %v1065_v23 }
 0x312   :  { %v1072_v61 = vsel %vm438_vm6, %v1066_v6, 0.0 }
 0x313   :  { %1073 = vadd.xlane.f32.xlu0 %v1072_v61 }
 0x314   :  { %v1040_v0 = vpop.permute.xlu1 %1039 }
 0x315   :  { %v1056_v25 = vperm.slane %v1040_v0, %v1666_v10 }
 0x317   :  { %v1063_v21 = vsel %vm152_vm3, %v1056_v25, %v1062_v26 }
 0x318   :  { %v1069_v27 = vsel %vm438_vm6, %v1063_v21, 0.0 }
 0x319   :  { %1070 = vadd.xlane.f32.xlu2 %v1069_v27 }
 0x32f   :  { %v444_v28 = vpop.xlane.xlu0 %443 }
 0x330   :  { %v455_v29 = vadd.f32 %v1631_v55, %v444_v28 }
 0x332   :  { %v1239_v30 = vmul.f32 -1.442695, %v455_v29 }
 0x334   :  { %1270 = vpow2.f32 %v1239_v30 }
 0x337   :  { %v654_v32 = vpop.xlane.xlu0 %653 }
 0x338   :  { %v665_v37 = vadd.f32 %v1636_v35, %v654_v32 }
 0x33a   :  { %v1271_v31 = vpop.eup %1270  ;;  %v1241_v41 = vmul.f32 -1.442695, %v665_v37 }
 0x33b   :  { %v463_v43 = vadd.f32 1.0, %v1271_v31 }
 0x33c   :  { %1272 = vpow2.f32 %v1241_v41 }
 0x33d   :  { %1274 = vrcp.f32 %v463_v43  ;;  %v490_v49 = vand.u32 2147483648, %v463_v43  ;;  %v488_v50 = vand.u32 2147483647, %v463_v43  ;;  %vm484_vm8 = vweird.f32 %v463_v43 }
 0x33f   :  { %v441_v10 = vpop.xlane.xlu1 %440  ;;  %v491_v1 = vor.u32 1.1754944e-38, %v490_v49  ;;  %vm489_vm10 = vcmp.eq.f32.partialorder %v488_v50, 8.507059e+37 }
 0x340   :  { %v454_v36 = vadd.f32 %v1631_v55, %v441_v10 }
 0x342   :  { %v1238_v39 = vmul.f32 -1.442695, %v454_v36  ;;  %v1273_v44 = vpop.eup %1272 }
 0x343   :  { %v1275_v40 = vpop.eup %1274  ;;  %v1829_v2 = vadd.f32 1.0, %v1273_v44 }
 0x344   :  { %1276 = vpow2.f32 %v1238_v39  ;;  %v480_v45 = vmul.f32 %v1275_v40, %v463_v43  ;;  %vm485_vm7 = vweird.f32 %v1275_v40 }
 0x345   :  { %1278 = vrcp.f32 %v1829_v2  ;;  %vm486_vm9 = vmor %vm484_vm8, %vm485_vm7  ;;  %vm694_vm0 = vweird.f32 %v1829_v2  ;;  %v700_v21 = vand.u32 2147483648, %v1829_v2  ;;  %v698_v29 = vand.u32 2147483647, %v1829_v2 }
 0x346   :  { %v481_v58 = vsub.f32 1.0, %v480_v45 }
 0x347   :  { %v651_v47 = vpop.xlane.xlu1 %650  ;;  %v701_v36 = vor.u32 1.1754944e-38, %v700_v21  ;;  %vm699_vm6 = vcmp.eq.f32.partialorder %v698_v29, 8.507059e+37 }
 0x348   :  { %v664_v48 = vadd.f32 %v1636_v35, %v651_v47  ;;  %v482_v22 = vmul.f32 %v1275_v40, %v481_v58 }
 0x34a   :  { %v1277_v53 = vpop.eup %1276  ;;  %v1240_v57 = vmul.f32 -1.442695, %v664_v48  ;;  %v483_v54 = vadd.f32 %v1275_v40, %v482_v22  ;;  %v872_v51 = vpop.permute.xlu0 %871 }
 0x34b   :  { %v462_v55 = vadd.f32 1.0, %v1277_v53  ;;  %v1833_v35 = vpop.eup %1278 }
 0x34c   :  { %1280 = vpow2.f32 %v1240_v57  ;;  %v487_v7 = vsel %vm486_vm9, %v1275_v40, %v483_v54  ;;  %v690_v59 = vmul.f32 %v1833_v35, %v1829_v2  ;;  %vm695_vm15 = vweird.f32 %v1833_v35 }
 0x34d   :  { %1282 = vrcp.f32 %v462_v55  ;;  %v492_v12 = vsel %vm489_vm10, %v491_v1, %v487_v7  ;;  %v475_v13 = vand.u32 2147483648, %v462_v55  ;;  %v473_v17 = vand.u32 2147483647, %v462_v55  ;;  %vm1843_vm2 = vmor %vm694_vm0, %vm695_vm15 }
 0x34e   :  { %1131 = vperm.xlu0 %1268, %v492_v12   ;;  %v691_v52 = vsub.f32 1.0, %v690_v59  ;;  %vm469_vm12 = vweird.f32 %v462_v55 }
 0x34f   :  { %v861_v4 = vpop.xlane.xlu1 %860  ;;  %v476_v6 = vor.u32 1.1754944e-38, %v475_v13  ;;  %vm474_vm14 = vcmp.eq.f32.partialorder %v473_v17, 8.507059e+37 }
 0x350   :  { %v874_v62 = vadd.f32 %v872_v51, %v861_v4  ;;  %v692_v33 = vmul.f32 %v1833_v35, %v691_v52 }
 0x352   :  { %v1281_v60 = vpop.eup %1280  ;;  %v1242_v34 = vmul.f32 -1.442695, %v874_v62  ;;  %v693_v25 = vadd.f32 %v1833_v35, %v692_v33 }
 0x353   :  { %v1283_v8 = vpop.eup %1282  ;;  %v672_v5 = vadd.f32 1.0, %v1281_v60 }
 0x354   :  { %1284 = vpow2.f32 %v1242_v34  ;;  %v465_v9 = vmul.f32 %v1283_v8, %v462_v55  ;;  %vm470_vm11 = vweird.f32 %v1283_v8  ;;  %v697_v31 = vsel %vm1843_vm2, %v1833_v35, %v693_v25 }
 0x355   :  { %1286 = vrcp.f32 %v672_v5  ;;  %vm471_vm13 = vmor %vm469_vm12, %vm470_vm11  ;;  %v685_v26 = vand.u32 2147483648, %v672_v5  ;;  %v683_v28 = vand.u32 2147483647, %v672_v5  ;;  %vm679_vm3 = vweird.f32 %v672_v5 }
 0x356   :  { %v466_v63 = vsub.f32 1.0, %v465_v9  ;;  %v702_v2 = vsel %vm699_vm6, %v701_v36, %v697_v31 }
 0x357   :  { %v864_v11 = vpop.xlane.xlu1 %863  ;;  %v686_v10 = vor.u32 1.1754944e-38, %v685_v26  ;;  %vm684_vm5 = vcmp.eq.f32.partialorder %v683_v28, 8.507059e+37 }
 0x358   :  { %v875_v38 = vadd.f32 %v872_v51, %v864_v11  ;;  %v467_v16 = vmul.f32 %v1283_v8, %v466_v63 }
 0x35a   :  { %v1285_v18 = vpop.eup %1284  ;;  %v1243_v20 = vmul.f32 -1.442695, %v875_v38  ;;  %v468_v56 = vadd.f32 %v1283_v8, %v467_v16 }
 0x35b   :  { %v1287_v23 = vpop.eup %1286  ;;  %v882_v46 = vadd.f32 1.0, %v1285_v18 }
 0x35c   :  { %1288 = vpow2.f32 %v1243_v20  ;;  %v472_v24 = vsel %vm471_vm13, %v1283_v8, %v468_v56  ;;  %v675_v61 = vmul.f32 %v1287_v23, %v672_v5  ;;  %vm680_vm1 = vweird.f32 %v1287_v23 }
 0x35d   :  { %1290 = vrcp.f32 %v882_v46  ;;  %v477_v3 = vsel %vm474_vm14, %v476_v6, %v472_v24  ;;  %vm681_vm4 = vmor %vm679_vm3, %vm680_vm1  ;;  %v895_v47 = vand.u32 2147483648, %v882_v46  ;;  %v893_v48 = vand.u32 2147483647, %v882_v46 }
 0x35e   :  { %1126 = vperm.xlu2 %1264, %v477_v3   ;;  %v676_v0 = vsub.f32 1.0, %v675_v61  ;;  %vm889_vm8 = vweird.f32 %v882_v46 }
 0x35f   :  { %v896_v50 = vor.u32 1.1754944e-38, %v895_v47  ;;  %vm894_vm10 = vcmp.eq.f32.partialorder %v893_v48, 8.507059e+37 }
 0x360   :  { %v677_v27 = vmul.f32 %v1287_v23, %v676_v0 }
 0x362   :  { %v1289_v32 = vpop.eup %1288  ;;  %v678_v37 = vadd.f32 %v1287_v23, %v677_v27 }
 0x363   :  { %v1291_v41 = vpop.eup %1290  ;;  %v883_v43 = vadd.f32 1.0, %v1289_v32 }
 0x364   :  { %v682_v39 = vsel %vm681_vm4, %v1287_v23, %v678_v37  ;;  %v885_v44 = vmul.f32 %v1291_v41, %v882_v46  ;;  %vm890_vm7 = vweird.f32 %v1291_v41 }
 0x365   :  { %1292 = vrcp.f32 %v883_v43  ;;  %v687_v40 = vsel %vm684_vm5, %v686_v10, %v682_v39  ;;  %vm891_vm9 = vmor %vm889_vm8, %vm890_vm7  ;;  %v910_v1 = vand.u32 2147483648, %v883_v43  ;;  %v908_v51 = vand.u32 2147483647, %v883_v43 }
 0x366   :  { %1138 = vperm.xlu1 %1269, %v687_v40   ;;  %1143 = vperm.xlu2 %1264, %v702_v2   ;;  %v886_v45 = vsub.f32 1.0, %v885_v44  ;;  %vm904_vm12 = vweird.f32 %v883_v43 }
 0x367   :  { %v911_v35 = vor.u32 1.1754944e-38, %v910_v1  ;;  %vm909_vm14 = vcmp.eq.f32.partialorder %v908_v51, 8.507059e+37 }
 0x368   :  { %v887_v58 = vmul.f32 %v1291_v41, %v886_v45 }
 0x36a   :  { %v888_v49 = vadd.f32 %v1291_v41, %v887_v58 }
 0x36b   :  { %v1293_v22 = vpop.eup %1292 }
 0x36c   :  { %v892_v53 = vsel %vm891_vm9, %v1291_v41, %v888_v49  ;;  %v900_v57 = vmul.f32 %v1293_v22, %v883_v43  ;;  %vm905_vm11 = vweird.f32 %v1293_v22 }
 0x36d   :  { %v897_v55 = vsel %vm894_vm10, %v896_v50, %v892_v53  ;;  %vm906_vm13 = vmor %vm904_vm12, %vm905_vm11 }
 0x36e   :  { %1152 = vperm.xlu1 %1269, %v897_v55   ;;  %v901_v54 = vsub.f32 1.0, %v900_v57  ;;  %v1302_v57 = vld [vmem:[%s1890_s5 + $0x8] sm:$0x3] }
 0x36f   :  { %v1082_v60 = vpop.permute.xlu1 %1081 }
 0x370   :  { %v902_v7 = vmul.f32 %v1293_v22, %v901_v54  ;;  %v1303_v54 = vld [vmem:[%s1890_s5 + $0xa] sm:$0x3] }
 0x372   :  { %v903_v12 = vadd.f32 %v1293_v22, %v902_v7  ;;  %v1304_v7 = vld [vmem:[%s1890_s5 + $0xc] sm:$0x3] }
 0x374   :  { %v907_v4 = vsel %vm906_vm13, %v1293_v22, %v903_v12  ;;  %v1305_v12 = vld [vmem:[%s1890_s5 + $0xe] sm:$0x3] }
 0x375   :  { %v912_v62 = vsel %vm909_vm14, %v911_v35, %v907_v4 }
 0x376   :  { %1157 = vperm.xlu2 %1264, %v912_v62  }
 0x386   :  { %v1074_v34 = vpop.xlane.xlu0 %1073 }
 0x387   :  { %v1085_v59 = vadd.f32 %v1082_v60, %v1074_v34 }
 0x389   :  { %v1245_v8 = vmul.f32 -1.442695, %v1085_v59 }
 0x38b   :  { %1294 = vpow2.f32 %v1245_v8 }
 0x38c   :  { %v1071_v5 = vpop.xlane.xlu2 %1070 }
 0x38d   :  { %v1084_v9 = vadd.f32 %v1082_v60, %v1071_v5 }
 0x38f   :  { %v1244_v63 = vmul.f32 -1.442695, %v1084_v9 }
 0x391   :  { %v1295_v52 = vpop.eup %1294  ;;  %1296 = vpow2.f32 %v1244_v63 }
 0x392   :  { %v1093_v11 = vadd.f32 1.0, %v1295_v52 }
 0x394   :  { %1298 = vrcp.f32 %v1093_v11  ;;  %v1120_v20 = vand.u32 2147483648, %v1093_v11  ;;  %v1118_v33 = vand.u32 2147483647, %v1093_v11  ;;  %vm1114_vm0 = vweird.f32 %v1093_v11 }
 0x396   :  { %v1121_v24 = vor.u32 1.1754944e-38, %v1120_v20  ;;  %vm1119_vm2 = vcmp.eq.f32.partialorder %v1118_v33, 8.507059e+37 }
 0x397   :  { %v1297_v13 = vpop.eup %1296 }
 0x398   :  { %v1092_v38 = vadd.f32 1.0, %v1297_v13 }
 0x39a   :  { %v1299_v16 = vpop.eup %1298  ;;  %1300 = vrcp.f32 %v1092_v38  ;;  %v1105_v25 = vand.u32 2147483648, %v1092_v38  ;;  %v1103_v21 = vand.u32 2147483647, %v1092_v38  ;;  %vm1099_vm4 = vweird.f32 %v1092_v38 }
 0x39b   :  { %v1110_v17 = vmul.f32 %v1299_v16, %v1093_v11  ;;  %vm1115_vm15 = vweird.f32 %v1299_v16 }
 0x39c   :  { %vm1116_vm1 = vmor %vm1114_vm0, %vm1115_vm15  ;;  %v1106_v28 = vor.u32 1.1754944e-38, %v1105_v25  ;;  %vm1104_vm6 = vcmp.eq.f32.partialorder %v1103_v21, 8.507059e+37 }
 0x39d   :  { %v1111_v18 = vsub.f32 1.0, %v1110_v17 }
 0x39f   :  { %v1112_v56 = vmul.f32 %v1299_v16, %v1111_v18 }
 0x3a0   :  { %v1301_v23 = vpop.eup %1300 }
 0x3a1   :  { %v1113_v46 = vadd.f32 %v1299_v16, %v1112_v56  ;;  %v1095_v6 = vmul.f32 %v1301_v23, %v1092_v38  ;;  %vm1100_vm3 = vweird.f32 %v1301_v23  ;;  %v1308_v56 = vld [vmem:[%s1890_s5 + $0x4] sm:$0x3] }
 0x3a2   :  { %vm1101_vm5 = vmor %vm1099_vm4, %vm1100_vm3 }
 0x3a3   :  { %v1117_v61 = vsel %vm1116_vm1, %v1299_v16, %v1113_v46  ;;  %v1096_v3 = vsub.f32 1.0, %v1095_v6 }
 0x3a4   :  { %v1122_v0 = vsel %vm1119_vm2, %v1121_v24, %v1117_v61 }
 0x3a5   :  { %1171 = vperm.xlu2 %1264, %v1122_v0   ;;  %v1097_v26 = vmul.f32 %v1301_v23, %v1096_v3 }
 0x3a7   :  { %v1098_v27 = vadd.f32 %v1301_v23, %v1097_v26 }
 0x3a9   :  { %v1102_v29 = vsel %vm1101_vm5, %v1301_v23, %v1098_v27  ;;  %v1309_v23 = vld [vmem:[%s1890_s5 + $0x6] sm:$0x3] }
 0x3aa   :  { %v1107_v30 = vsel %vm1104_vm6, %v1106_v28, %v1102_v29 }
 0x3ab   :  { %1166 = vperm.xlu1 %1269, %v1107_v30  }
 0x3b8   :  { %v1127_v32 = vpop.permute.xlu2 %1126 }
 0x3b9   :  { %v1134_v34 = vmul.f32 %v1127_v32, %v1466_v19 }
 0x3c0   :  { %v1144_v37 = vpop.permute.xlu2 %1143  ;;  %v1132_v31 = vpop.permute.xlu0 %1131 }
 0x3c1   :  { %v1147_v43 = vmul.f32 %v1144_v37, %v1460_v15  ;;  %v1135_v10 = vmul.f32 %v1132_v31, %v1466_v19 }
 0x3c3   :  { %v1149_v39 = vadd.f32 %v1147_v43, %v1135_v10 }
 0x3d0   :  { %v1158_v41 = vpop.permute.xlu2 %1157 }
 0x3d1   :  { %v1161_v36 = vmul.f32 %v1158_v41, %v1457_v14 }
 0x3d3   :  { %v1163_v40 = vadd.f32 %v1161_v36, %v1149_v39 }
 0x3d8   :  { %v1139_v4 = vpop.permute.xlu1 %1138 }
 0x3d9   :  { %v1146_v60 = vmul.f32 %v1139_v4, %v1460_v15  ;;  %v1306_v15 = vld [vmem:[%s1890_s5] sm:$0x3] }
 0x3db   :  { %v1148_v8 = vadd.f32 %v1146_v60, %v1134_v34 }
 0x3e0   :  { %v1153_v62 = vpop.permute.xlu1 %1152 }
 0x3e1   :  { %v1160_v59 = vmul.f32 %v1153_v62, %v1457_v14  ;;  %v1307_v14 = vld [vmem:[%s1890_s5 + $0x2] sm:$0x3] }
 0x3e3   :  { %v1162_v9 = vadd.f32 %v1160_v59, %v1148_v8 }
 0x3ff   :  { %v1172_v44 = vpop.permute.xlu2 %1171 }
 0x400   :  { %v1175_v2 = vmul.f32 %v1172_v44, %v1535_v42 }
 0x402   :  { %v1177_v45 = vadd.f32 %v1175_v2, %v1163_v40 }
 0x404   :  { %v1183_v47 = vrot.slane %v1177_v45, 1  ;;  %v1184_v58 = vrot.slane %v1177_v45, 2  ;;  %v1185_v48 = vrot.slane %v1177_v45, 3  ;;  %v1190_v49 = vperm.slane %v1177_v45, 0 }
 0x406   :  { %v1191_v22 = vperm.slane %v1183_v47, 0  ;;  %v1192_v50 = vperm.slane %v1184_v58, 0  ;;  %v1193_v53 = vperm.slane %v1185_v48, 0  ;;  %v1206_v55 = vmul.f32 %v1302_v57, %v1190_v49 }
 0x408   :  { %v1207_v1 = vmul.f32 %v1303_v54, %v1191_v22  ;;  %v1208_v51 = vmul.f32 %v1304_v7, %v1192_v50  ;;  %v1209_v35 = vmul.f32 %v1305_v12, %v1193_v53  ;;  %1214 = vst [vmem:[#allocation7 + $0x8] sm:$0x3] %v1206_v55 }
 0x40a   :  { %1215 = vst [vmem:[#allocation7 + $0xa] sm:$0x3] %v1207_v1 }
 0x40b   :  { %1216 = vst [vmem:[#allocation7 + $0xc] sm:$0x3] %v1208_v51 }
 0x40c   :  { %1217 = vst [vmem:[#allocation7 + $0xe] sm:$0x3] %v1209_v35 }
 0x41d   :  { %v1167_v5 = vpop.permute.xlu1 %1166 }
 0x41e   :  { %v1174_v63 = vmul.f32 %v1167_v5, %v1535_v42 }
 0x420   :  { %v1176_v52 = vadd.f32 %v1174_v63, %v1162_v9 }
 0x422   :  { %v1180_v11 = vrot.slane %v1176_v52, 1  ;;  %v1181_v13 = vrot.slane %v1176_v52, 2  ;;  %v1182_v38 = vrot.slane %v1176_v52, 3  ;;  %v1186_v16 = vperm.slane %v1176_v52, 0 }
 0x424   :  { %v1187_v17 = vperm.slane %v1180_v11, 0  ;;  %v1188_v18 = vperm.slane %v1181_v13, 0  ;;  %v1189_v20 = vperm.slane %v1182_v38, 0  ;;  %v1202_v19 = vmul.f32 %v1306_v15, %v1186_v16 }
 0x426   :  { %v1203_v42 = vmul.f32 %v1307_v14, %v1187_v17  ;;  %v1204_v33 = vmul.f32 %v1308_v56, %v1188_v18  ;;  %v1205_v46 = vmul.f32 %v1309_v23, %v1189_v20  ;;  %1210 = vst [vmem:[#allocation7] sm:$0x3] %v1202_v19 }
 0x428   :  { %1211 = vst [vmem:[#allocation7 + $0x2] sm:$0x3] %v1203_v42 }
 0x429   :  { %1212 = vst [vmem:[#allocation7 + $0x4] sm:$0x3] %v1204_v33 }
 0x42a   :  { %1213 = vst [vmem:[#allocation7 + $0x6] sm:$0x3] %v1205_v46 }
 0x42b   :  { %1230 = dma.vmem_to_hbm [thread:$0]  %s1223_s21, 256, %s1225_s24, [#allocation4], %s1392_s6, %s1392_s6, %s1393_s30  }
 0x42c   :  { %1386 = dma.done.wait [#allocation4], 256  }
 0x42d   :  { %1387 = vsyncadd [#allocation4], 4294967040 }
 0x42e   :  { %1235 = vsyncpa [#allocation3], 1 }
 0x42f   :  { %1236 = vsyncpa [#allocation6], 1 }
 0x430   :  { %1237 = vsyncpa [#allocation4], 1 }

</bundles_post_ra>
